<compile_context>
chip_gen: v6e
topology: v6e:2x2x1
jax: 0.10.0
libtpu: 0.0.40
codegen_flags: <defaults>
</compile_context>

<pallas_src>
import functools
import math

import jax
import jax.numpy as jnp
from jax import lax
from jax.experimental import pallas as pl
from jax.experimental.pallas import tpu as pltpu


# -------------------- in-kernel helpers --------------------

def _layer_norm(x, gamma, beta, eps):
    """f32 LayerNorm over the last axis (stats kept in f32)."""
    mu = jnp.mean(x, axis=-1, keepdims=True)
    xc = x - mu
    var = jnp.mean(xc * xc, axis=-1, keepdims=True)
    return (xc * lax.rsqrt(var + eps)) * gamma + beta


# -------------------- fused forward kernel --------------------

def _fused_forward_kernel(
    # batch-indexed / constant inputs
    emb_ref,       # (1, S, E)  bf16  gathered token embeddings for this batch
    pe_ref,        # (S, D)     f32   positional encoding (first S rows)
    proj_w_ref,    # (E, D)     bf16
    proj_b_ref,    # (1, D)     f32
    fln_g_ref,     # (1, D)     f32   final LayerNorm
    fln_b_ref,     # (1, D)     f32
    vq_w_ref,      # (D, Vp)    bf16  quantiser weight_proj (V padded to 128-mult)
    vq_b_ref,      # (1, Vp)    f32   (padding entries -1e30)
    # per-layer inputs (block index = layer id, streamed / double-buffered)
    qkv_w_ref,     # (1, 3*nhead, D, Dh) bf16  (q heads pre-scaled by 1/sqrt(Dh))
    qkv_b_ref,     # (1, 3*nhead, 1, Dh) f32
    wo_ref,        # (1, nhead, Dh, D)   bf16
    out_b_ref,     # (1, 1, D)  f32
    ln1_g_ref, ln1_b_ref,      # (1, 1, D) f32
    ff1_w_ref,     # (1, D, F)  bf16
    ff1_b_ref,     # (1, 1, F)  f32
    ff2_w_ref,     # (1, F, D)  bf16
    ff2_b_ref,     # (1, 1, D)  f32
    ln2_g_ref, ln2_b_ref,      # (1, 1, D) f32
    # output
    idx_ref,       # (1, S, 128) int32  lane-dense codeword indices
    # scratch
    x_ref,         # VMEM (S, D) f32   activation resident across layers
    *, nhead, eps,
):
    layer = pl.program_id(1)
    n_layers = pl.num_programs(1)

    # ---- prologue (layer 0): proj(embedding) + bias + positional encoding ----
    @pl.when(layer == 0)
    def _():
        x0 = jnp.dot(emb_ref[0], proj_w_ref[...],
                     preferred_element_type=jnp.float32)
        x_ref[...] = x0 + proj_b_ref[...] + pe_ref[...]
        # TODO(synk): nn.Dropout in PositionalEncoding / encoder layers is a
        # no-op here (inference / eval semantics).

    # ---- transformer encoder layer `layer` (post-norm, ReLU FFN) ----
    x = x_ref[...]                                   # (S, D) f32
    S, D = x.shape
    Dh = D // nhead
    xb = x.astype(jnp.bfloat16)

    # Per-head q/k/v via leading-axis-indexed weight blocks (no lane slicing).
    # Scores for all heads are stacked along the SUBLANE axis -> ONE softmax.
    scores = []
    v_heads = []
    for h in range(nhead):
        qh = (jnp.dot(xb, qkv_w_ref[0, h],
                      preferred_element_type=jnp.float32)
              + qkv_b_ref[0, h])                                      # (S, Dh)
        kh = (jnp.dot(xb, qkv_w_ref[0, nhead + h],
                      preferred_element_type=jnp.float32)
              + qkv_b_ref[0, nhead + h])                              # (S, Dh)
        vh = (jnp.dot(xb, qkv_w_ref[0, 2 * nhead + h],
                      preferred_element_type=jnp.float32)
              + qkv_b_ref[0, 2 * nhead + h])                          # (S, Dh)
        v_heads.append(vh.astype(jnp.bfloat16))
        # contract last dims of q and k directly (no transpose of k)
        scores.append(lax.dot_general(
            qh.astype(jnp.bfloat16), kh.astype(jnp.bfloat16),
            (((1,), (1,)), ((), ())),
            preferred_element_type=jnp.float32))                      # (S, S)

    s = jnp.concatenate(scores, axis=0)              # (nhead*S, S) sublane stack
    s = s - jnp.max(s, axis=-1, keepdims=True)       # one softmax for all heads
    p = jnp.exp(s)
    p = p * pl.reciprocal(jnp.sum(p, axis=-1, keepdims=True), approx=True)
    p = p.astype(jnp.bfloat16)

    # Fold the output projection per head: attn = out_b + sum_h (p_h @ v_h) @ Wo_h
    attn = jnp.broadcast_to(out_b_ref[0], (S, D))                     # (S, D) f32
    for h in range(nhead):
        ph = p[h * S:(h + 1) * S, :]                                  # sublane slice
        oh = jnp.dot(ph, v_heads[h], preferred_element_type=jnp.float32)  # (S, Dh)
        attn = attn + jnp.dot(oh.astype(jnp.bfloat16), wo_ref[0, h],
                              preferred_element_type=jnp.float32)     # (S, D)

    h1 = _layer_norm(x + attn, ln1_g_ref[0], ln1_b_ref[0], eps)       # norm1(x+sa)

    ff = jnp.dot(h1.astype(jnp.bfloat16), ff1_w_ref[0],
                 preferred_element_type=jnp.float32) + ff1_b_ref[0]
    ff = jnp.maximum(ff, 0.0)                                         # ReLU
    ff = jnp.dot(ff.astype(jnp.bfloat16), ff2_w_ref[0],
                 preferred_element_type=jnp.float32) + ff2_b_ref[0]

    x_ref[...] = _layer_norm(h1 + ff, ln2_g_ref[0], ln2_b_ref[0], eps)  # norm2

    # ---- epilogue (last layer): final LayerNorm + GumbelVQ argmax ----
    @pl.when(layer == n_layers - 1)
    def _():
        hn = _layer_norm(x_ref[...], fln_g_ref[...], fln_b_ref[...], eps)
        logits = jnp.dot(hn.astype(jnp.bfloat16), vq_w_ref[...],
                         preferred_element_type=jnp.float32) + vq_b_ref[...]
        Vp = logits.shape[-1]                        # lane-dense (padded) width
        col = lax.broadcasted_iota(jnp.int32, logits.shape, 1)
        mx = jnp.max(logits, axis=-1, keepdims=True)
        # first-argmax (matches torch argmax tie-breaking toward lowest index)
        idx = jnp.min(jnp.where(logits >= mx, col, Vp), axis=-1, keepdims=True)
        idx_ref[0] = jnp.broadcast_to(idx, idx_ref.shape[1:])   # lane-dense store


# -------------------- BlockSpec helpers (grid = (batch, layer)) --------------------

def _const_spec(shape):
    n = len(shape)
    return pl.BlockSpec(shape, lambda b, l, _n=n: (0,) * _n)


def _batch_spec(shape):
    n = len(shape) - 1
    return pl.BlockSpec(shape, lambda b, l, _n=n: (b,) + (0,) * _n)


def _layer_spec(shape):
    n = len(shape) - 1
    return pl.BlockSpec(shape, lambda b, l, _n=n: (l,) + (0,) * _n)


# -------------------- forward wrapper --------------------

def encoder_respeller_forward(packed, token_ids, *, nhead):
    B, S = token_ids.shape
    emb = packed["embedding"][token_ids]                 # (B,S,E) row gather (glue)
    E = emb.shape[-1]
    D = packed["proj_w"].shape[1]
    Vp = packed["vq_w"].shape[1]
    F = packed["ff1_w"].shape[-1]
    L = packed["qkv_w"].shape[0]
    Dh = D // nhead

    emb = emb.astype(jnp.bfloat16)                       # (B, S, E)
    pe = packed["pe"][:S]                                # (S, D) — no B-wise tile

    grid_spec = pltpu.PrefetchScalarGridSpec(
        num_scalar_prefetch=0,
        grid=(B, L),
        in_specs=[
            _batch_spec((1, S, E)),              # emb (per batch)
            _const_spec((S, D)),                 # pe
            _const_spec((E, D)),                 # proj_w
            _const_spec((1, D)),                 # proj_b
            _const_spec((1, D)),                 # final ln gamma
            _const_spec((1, D)),                 # final ln beta
            _const_spec((D, Vp)),                # vq weight_proj (padded)
            _const_spec((1, Vp)),                # vq bias (padded)
            _layer_spec((1, 3 * nhead, D, Dh)),  # qkv_w (per-head packed)
            _layer_spec((1, 3 * nhead, 1, Dh)),  # qkv_b
            _layer_spec((1, nhead, Dh, D)),      # wo (per-head packed)
            _layer_spec((1, 1, D)),              # out_proj bias
            _layer_spec((1, 1, D)),              # ln1 gamma
            _layer_spec((1, 1, D)),              # ln1 beta
            _layer_spec((1, D, F)),              # ff1_w
            _layer_spec((1, 1, F)),              # ff1_b
            _layer_spec((1, F, D)),              # ff2_w
            _layer_spec((1, 1, D)),              # ff2_b
            _layer_spec((1, 1, D)),              # ln2 gamma
            _layer_spec((1, 1, D)),              # ln2 beta
        ],
        out_specs=_batch_spec((1, S, 128)),
        scratch_shapes=[pltpu.VMEM((S, D), jnp.float32)],
    )

    idx_lanes = pl.pallas_call(
        functools.partial(_fused_forward_kernel, nhead=nhead, eps=1e-5),
        out_shape=jax.ShapeDtypeStruct((B, S, 128), jnp.int32),
        grid_spec=grid_spec,
        compiler_params=pltpu.CompilerParams(
            # batch axis parallel (uses both v7x TensorCores), layer axis sequential
            dimension_semantics=("parallel", "arbitrary"),
            vmem_limit_bytes=32 * 1024 * 1024,
        ),
    )(
        emb, pe, packed["proj_w"], packed["proj_b"],
        packed["final_ln_g"], packed["final_ln_b"],
        packed["vq_w"], packed["vq_b"],
        packed["qkv_w"], packed["qkv_b"], packed["wo"], packed["out_b"],
        packed["ln1_g"], packed["ln1_b"],
        packed["ff1_w"], packed["ff1_b"], packed["ff2_w"], packed["ff2_b"],
        packed["ln2_g"], packed["ln2_b"],
    )

    g_idx = idx_lanes[:, :, 0]                                       # (B, S) int32
    # Exact f32 codeword rows (== hard one-hot @ quantiser.vars), gathered outside.
    g_emb = jnp.take(packed["codebook"], g_idx, axis=0)              # (B, S, E)
    return g_emb, g_idx


# -------------------- parameter init (torch layout) + packing --------------------

def sinusoid_pe(max_len, d_model):
    pos = jnp.arange(max_len, dtype=jnp.float32)[:, None]
    div = jnp.exp(jnp.arange(0, d_model, 2, dtype=jnp.float32)
                  * (-math.log(10000.0) / d_model))
    pe = jnp.zeros((max_len, d_model), jnp.float32)
    pe = pe.at[:, 0::2].set(jnp.sin(pos * div))
    pe = pe.at[:, 1::2].set(jnp.cos(pos * div))
    return pe


def init_params(key, *, n_symbols, d_embedding, d_model, nhead, num_layers,
                dim_ff, max_len):
    """Deterministic params in a torch-like layout (Linear weights stored (in, out))."""
    def nrm(k, shape, scale=0.02):
        return (scale * jax.random.normal(k, shape)).astype(jnp.float32)

    keys = iter(jax.random.split(key, 8 + 8 * num_layers))
    embedding = nrm(next(keys), (n_symbols, d_embedding), 1.0 / math.sqrt(d_embedding))

    params = {
        "nhead": nhead,
        "embedding": embedding,                               # pretrained/frozen table
        "proj_w": nrm(next(keys), (d_embedding, d_model)),
        "proj_b": nrm(next(keys), (d_model,)),
        "pe": sinusoid_pe(max_len, d_model),
        "final_ln_g": jnp.ones((d_model,), jnp.float32),
        "final_ln_b": jnp.zeros((d_model,), jnp.float32),
        # GumbelVectorQuantizer (groups=1): weight_proj + codebook (== embedding table)
        "vq_w": nrm(next(keys), (d_model, n_symbols)),
        "vq_b": nrm(next(keys), (n_symbols,)),
        "codebook": embedding,                                # quantiser.vars init
        "layers": [],
    }
    for _ in range(num_layers):
        params["layers"].append({
            "in_proj_w": nrm(next(keys), (d_model, 3 * d_model)),
            "in_proj_b": nrm(next(keys), (3 * d_model,)),
            "out_proj_w": nrm(next(keys), (d_model, d_model)),
            "out_proj_b": nrm(next(keys), (d_model,)),
            "ln1_g": jnp.ones((d_model,), jnp.float32),
            "ln1_b": jnp.zeros((d_model,), jnp.float32),
            "ff1_w": nrm(next(keys), (d_model, dim_ff)),
            "ff1_b": nrm(next(keys), (dim_ff,)),
            "ff2_w": nrm(next(keys), (dim_ff, d_model)),
            "ff2_b": nrm(next(keys), (d_model,)),
            "ln2_g": jnp.ones((d_model,), jnp.float32),
            "ln2_b": jnp.zeros((d_model,), jnp.float32),
        })
    return params


def pack_params(p):
    """Pack params for the fused kernel:
       - stack per-layer params; matmul weights bf16 (f32 accumulate in-kernel)
       - repack in_proj/out_proj PER HEAD so the kernel never lane-slices
       - fold the 1/sqrt(head_dim) scale into the q heads (weights + bias)
       - pad the quantiser output dim to a lane-dense multiple of 128
    """
    nhead = p["nhead"]
    D = p["proj_w"].shape[1]
    Dh = D // nhead
    L = len(p["layers"])
    scale = 1.0 / math.sqrt(Dh)
    n_symbols = p["vq_w"].shape[1]
    Vp = ((n_symbols + 127) // 128) * 128

    def stack(name):
        return jnp.stack([lp[name] for lp in p["layers"]])

    # in_proj (L, D, 3D) -> (L, 3*nhead, D, Dh); q heads (indices 0..nhead-1) pre-scaled
    in_w = stack("in_proj_w").reshape(L, D, 3, nhead, Dh)
    in_w = jnp.transpose(in_w, (0, 2, 3, 1, 4)).reshape(L, 3 * nhead, D, Dh)
    in_b = stack("in_proj_b").reshape(L, 3 * nhead, 1, Dh)
    qscale = jnp.concatenate([jnp.full((nhead,), scale, jnp.float32),
                              jnp.ones((2 * nhead,), jnp.float32)])
    qkv_w = in_w * qscale[None, :, None, None]
    qkv_b = in_b * qscale[None, :, None, None]

    # out_proj (L, D, D) -> per-head row blocks (L, nhead, Dh, D)
    wo = stack("out_proj_w").reshape(L, nhead, Dh, D)

    # quantiser weight_proj padded to lane-dense width (pad logits are -1e30)
    vq_w = jnp.zeros((D, Vp), jnp.float32).at[:, :n_symbols].set(p["vq_w"])
    vq_b = jnp.full((Vp,), -1e30, jnp.float32).at[:n_symbols].set(p["vq_b"])

    return {
        "embedding": p["embedding"],                       # f32, gathered in wrapper
        "codebook": p["codebook"],                         # f32, exact row gather
        "pe": p["pe"],
        "proj_w": p["proj_w"].astype(jnp.bfloat16),
        "proj_b": p["proj_b"].reshape(1, D),
        "final_ln_g": p["final_ln_g"].reshape(1, D),
        "final_ln_b": p["final_ln_b"].reshape(1, D),
        "vq_w": vq_w.astype(jnp.bfloat16),                 # (D, Vp)
        "vq_b": vq_b.reshape(1, Vp),
        "qkv_w": qkv_w.astype(jnp.bfloat16),               # (L, 3*nhead, D, Dh)
        "qkv_b": qkv_b,                                    # (L, 3*nhead, 1, Dh)
        "wo": wo.astype(jnp.bfloat16),                     # (L, nhead, Dh, D)
        "out_b": stack("out_proj_b")[:, None, :],          # (L, 1, D)
        "ln1_g": stack("ln1_g")[:, None, :],
        "ln1_b": stack("ln1_b")[:, None, :],
        "ff1_w": stack("ff1_w").astype(jnp.bfloat16),
        "ff1_b": stack("ff1_b")[:, None, :],
        "ff2_w": stack("ff2_w").astype(jnp.bfloat16),
        "ff2_b": stack("ff2_b")[:, None, :],
        "ln2_g": stack("ln2_g")[:, None, :],
        "ln2_b": stack("ln2_b")[:, None, :],
    }


# -------------------- demo --------------------

if __name__ == "__main__":
    # NOTE(perf): at these demo sizes the kernel is latency-bound; batching more
    # sequences per call (larger B*S) is the lever for MXU utilization on v6e/v7x.
    B, S = 2, 8
    n_symbols = 48
    d_embedding = 64        # grapheme_embedding_dim == d_embedding (as in the module)
    d_model = 128
    nhead = 4
    num_layers = 2
    dim_ff = 256
    max_len = 64

    key = jax.random.PRNGKey(0)
    pkey, ikey = jax.random.split(key)
    params = init_params(
        pkey, n_symbols=n_symbols, d_embedding=d_embedding, d_model=d_model,
        nhead=nhead, num_layers=num_layers, dim_ff=dim_ff, max_len=max_len)
    packed = pack_params(params)

    token_ids = jax.random.randint(ikey, (B, S), 0, n_symbols, dtype=jnp.int32)

    # TODO(synk): training-time Gumbel-softmax sampling / temperature annealing of
    # GumbelVectorQuantizer is not implemented; eval argmax hard-selection path only.
    fwd = jax.jit(functools.partial(encoder_respeller_forward, nhead=nhead))
    g_embeddings, g_indices = fwd(packed, token_ids)
    jax.block_until_ready((g_embeddings, g_indices))

    assert g_embeddings.shape == (B, S, d_embedding)
    assert g_indices.shape == (B, S)
    assert g_indices.dtype == jnp.int32
    assert bool(jnp.all((g_indices >= 0) & (g_indices < n_symbols)))

    print("KERNEL_OK")
</pallas_src>

<mosaic_0001>
module attributes {stable_mosaic.version = 11 : i64} {
  func.func @_fused_forward_kernel(%arg0: i32, %arg1: i32, %arg2: memref<1x8x64xbf16, #tpu.memory_space<vmem>>, %arg3: memref<8x128xf32, #tpu.memory_space<vmem>>, %arg4: memref<64x128xbf16, #tpu.memory_space<vmem>>, %arg5: memref<1x128xf32, #tpu.memory_space<vmem>>, %arg6: memref<1x128xf32, #tpu.memory_space<vmem>>, %arg7: memref<1x128xf32, #tpu.memory_space<vmem>>, %arg8: memref<128x128xbf16, #tpu.memory_space<vmem>>, %arg9: memref<1x128xf32, #tpu.memory_space<vmem>>, %arg10: memref<1x12x128x32xbf16, #tpu.memory_space<vmem>>, %arg11: memref<1x12x1x32xf32, #tpu.memory_space<vmem>>, %arg12: memref<1x4x32x128xbf16, #tpu.memory_space<vmem>>, %arg13: memref<1x1x128xf32, #tpu.memory_space<vmem>>, %arg14: memref<1x1x128xf32, #tpu.memory_space<vmem>>, %arg15: memref<1x1x128xf32, #tpu.memory_space<vmem>>, %arg16: memref<1x128x256xbf16, #tpu.memory_space<vmem>>, %arg17: memref<1x1x256xf32, #tpu.memory_space<vmem>>, %arg18: memref<1x256x128xbf16, #tpu.memory_space<vmem>>, %arg19: memref<1x1x128xf32, #tpu.memory_space<vmem>>, %arg20: memref<1x1x128xf32, #tpu.memory_space<vmem>>, %arg21: memref<1x1x128xf32, #tpu.memory_space<vmem>>, %arg22: memref<1x8x128xi32, #tpu.memory_space<vmem>>, %arg23: memref<8x128xf32, #tpu.memory_space<vmem>>) attributes {dimension_semantics = [#tpu.dimension_semantics<parallel>, #tpu.dimension_semantics<arbitrary>], iteration_bounds = array<i64: 2, 2>, scalar_prefetch = 0 : i64, scratch_operands = 1 : i64, tpu.core_type = #tpu.core_type<tc>, window_params = [{transform_indices = @transform_0, window_bounds = array<i64: 1, 8, 64>}, {pipeline_mode = #tpu.pipeline_mode<synchronous>, transform_indices = @transform_1, window_bounds = array<i64: 8, 128>}, {pipeline_mode = #tpu.pipeline_mode<synchronous>, transform_indices = @transform_2, window_bounds = array<i64: 64, 128>}, {pipeline_mode = #tpu.pipeline_mode<synchronous>, transform_indices = @transform_3, window_bounds = array<i64: 1, 128>}, {pipeline_mode = #tpu.pipeline_mode<synchronous>, transform_indices = @transform_4, window_bounds = array<i64: 1, 128>}, {pipeline_mode = #tpu.pipeline_mode<synchronous>, transform_indices = @transform_5, window_bounds = array<i64: 1, 128>}, {pipeline_mode = #tpu.pipeline_mode<synchronous>, transform_indices = @transform_6, window_bounds = array<i64: 128, 128>}, {pipeline_mode = #tpu.pipeline_mode<synchronous>, transform_indices = @transform_7, window_bounds = array<i64: 1, 128>}, {transform_indices = @transform_8, window_bounds = array<i64: 1, 12, 128, 32>}, {transform_indices = @transform_9, window_bounds = array<i64: 1, 12, 1, 32>}, {transform_indices = @transform_10, window_bounds = array<i64: 1, 4, 32, 128>}, {transform_indices = @transform_11, window_bounds = array<i64: 1, 1, 128>}, {transform_indices = @transform_12, window_bounds = array<i64: 1, 1, 128>}, {transform_indices = @transform_13, window_bounds = array<i64: 1, 1, 128>}, {transform_indices = @transform_14, window_bounds = array<i64: 1, 128, 256>}, {transform_indices = @transform_15, window_bounds = array<i64: 1, 1, 256>}, {transform_indices = @transform_16, window_bounds = array<i64: 1, 256, 128>}, {transform_indices = @transform_17, window_bounds = array<i64: 1, 1, 128>}, {transform_indices = @transform_18, window_bounds = array<i64: 1, 1, 128>}, {transform_indices = @transform_19, window_bounds = array<i64: 1, 1, 128>}, {transform_indices = @transform_20, window_bounds = array<i64: 1, 8, 128>}]} {
    %c0_i32 = arith.constant 0 : i32
    %0 = arith.cmpi eq, %arg1, %c0_i32 : i32
    %1 = arith.extui %0 : i1 to i32
    %c0_i32_0 = arith.constant 0 : i32
    %2 = arith.cmpi ne, %1, %c0_i32_0 : i32
    scf.if %2 {
      %c0_171 = arith.constant 0 : index
      %c0_172 = arith.constant 0 : index
      %c0_173 = arith.constant 0 : index
      %221 = vector.load %arg2[%c0_171, %c0_172, %c0_173] : memref<1x8x64xbf16, #tpu.memory_space<vmem>>, vector<1x8x64xbf16>
      %222 = vector.shape_cast %221 : vector<1x8x64xbf16> to vector<8x64xbf16>
      %c0_174 = arith.constant 0 : index
      %c0_175 = arith.constant 0 : index
      %223 = vector.load %arg4[%c0_174, %c0_175] : memref<64x128xbf16, #tpu.memory_space<vmem>>, vector<64x128xbf16>
      %cst_176 = arith.constant dense<0.000000e+00> : vector<8x128xf32>
      %224 = tpu.matmul %222, %223, %cst_176 {dimension_numbers = #tpu.dot_dimension_numbers<[1], [0], [0], [1], [0, 0, 1, 1], [], []>} : vector<8x64xbf16>, vector<64x128xbf16>, vector<8x128xf32> -> vector<8x128xf32>
      %c0_177 = arith.constant 0 : index
      %c0_178 = arith.constant 0 : index
      %225 = vector.load %arg5[%c0_177, %c0_178] : memref<1x128xf32, #tpu.memory_space<vmem>>, vector<1x128xf32>
      %226 = vector.broadcast %225 : vector<1x128xf32> to vector<8x128xf32>
      %227 = arith.addf %224, %226 : vector<8x128xf32>
      %c0_179 = arith.constant 0 : index
      %c0_180 = arith.constant 0 : index
      %228 = vector.load %arg3[%c0_179, %c0_180] : memref<8x128xf32, #tpu.memory_space<vmem>>, vector<8x128xf32>
      %229 = arith.addf %227, %228 : vector<8x128xf32>
      %c0_181 = arith.constant 0 : index
      %c0_182 = arith.constant 0 : index
      %230 = vector.load %arg23[%c0_181, %c0_182] : memref<8x128xf32, #tpu.memory_space<vmem>>, vector<8x128xf32>
      tpu.vector_store %arg23[%c0_181, %c0_182], %229 {strides = array<i32>} : memref<8x128xf32, #tpu.memory_space<vmem>>, vector<8x128xf32>,
    } else {
    }
    %c0 = arith.constant 0 : index
    %c0_1 = arith.constant 0 : index
    %3 = vector.load %arg23[%c0, %c0_1] : memref<8x128xf32, #tpu.memory_space<vmem>>, vector<8x128xf32>
    %4 = arith.truncf %3 : vector<8x128xf32> to vector<8x128xbf16>
    %c0_2 = arith.constant 0 : index
    %c0_3 = arith.constant 0 : index
    %c0_4 = arith.constant 0 : index
    %c0_5 = arith.constant 0 : index
    %5 = vector.load %arg10[%c0_2, %c0_3, %c0_4, %c0_5] : memref<1x12x128x32xbf16, #tpu.memory_space<vmem>>, vector<1x1x128x32xbf16>
    %6 = vector.shape_cast %5 : vector<1x1x128x32xbf16> to vector<128x32xbf16>
    %cst = arith.constant dense<0.000000e+00> : vector<8x32xf32>
    %7 = tpu.matmul %4, %6, %cst {dimension_numbers = #tpu.dot_dimension_numbers<[1], [0], [0], [1], [0, 0, 1, 1], [], []>} : vector<8x128xbf16>, vector<128x32xbf16>, vector<8x32xf32> -> vector<8x32xf32>
    %c0_6 = arith.constant 0 : index
    %c0_7 = arith.constant 0 : index
    %c0_8 = arith.constant 0 : index
    %c0_9 = arith.constant 0 : index
    %8 = vector.load %arg11[%c0_6, %c0_7, %c0_8, %c0_9] : memref<1x12x1x32xf32, #tpu.memory_space<vmem>>, vector<1x1x1x32xf32>
    %9 = vector.shape_cast %8 : vector<1x1x1x32xf32> to vector<1x32xf32>
    %10 = vector.broadcast %9 : vector<1x32xf32> to vector<8x32xf32>
    %11 = arith.addf %7, %10 : vector<8x32xf32>
    %c0_10 = arith.constant 0 : index
    %c4 = arith.constant 4 : index
    %c0_11 = arith.constant 0 : index
    %c0_12 = arith.constant 0 : index
    %12 = vector.load %arg10[%c0_10, %c4, %c0_11, %c0_12] : memref<1x12x128x32xbf16, #tpu.memory_space<vmem>>, vector<1x1x128x32xbf16>
    %13 = vector.shape_cast %12 : vector<1x1x128x32xbf16> to vector<128x32xbf16>
    %cst_13 = arith.constant dense<0.000000e+00> : vector<8x32xf32>
    %14 = tpu.matmul %4, %13, %cst_13 {dimension_numbers = #tpu.dot_dimension_numbers<[1], [0], [0], [1], [0, 0, 1, 1], [], []>} : vector<8x128xbf16>, vector<128x32xbf16>, vector<8x32xf32> -> vector<8x32xf32>
    %c0_14 = arith.constant 0 : index
    %c4_15 = arith.constant 4 : index
    %c0_16 = arith.constant 0 : index
    %c0_17 = arith.constant 0 : index
    %15 = vector.load %arg11[%c0_14, %c4_15, %c0_16, %c0_17] : memref<1x12x1x32xf32, #tpu.memory_space<vmem>>, vector<1x1x1x32xf32>
    %16 = vector.shape_cast %15 : vector<1x1x1x32xf32> to vector<1x32xf32>
    %17 = vector.broadcast %16 : vector<1x32xf32> to vector<8x32xf32>
    %18 = arith.addf %14, %17 : vector<8x32xf32>
    %c0_18 = arith.constant 0 : index
    %c8 = arith.constant 8 : index
    %c0_19 = arith.constant 0 : index
    %c0_20 = arith.constant 0 : index
    %19 = vector.load %arg10[%c0_18, %c8, %c0_19, %c0_20] : memref<1x12x128x32xbf16, #tpu.memory_space<vmem>>, vector<1x1x128x32xbf16>
    %20 = vector.shape_cast %19 : vector<1x1x128x32xbf16> to vector<128x32xbf16>
    %cst_21 = arith.constant dense<0.000000e+00> : vector<8x32xf32>
    %21 = tpu.matmul %4, %20, %cst_21 {dimension_numbers = #tpu.dot_dimension_numbers<[1], [0], [0], [1], [0, 0, 1, 1], [], []>} : vector<8x128xbf16>, vector<128x32xbf16>, vector<8x32xf32> -> vector<8x32xf32>
    %c0_22 = arith.constant 0 : index
    %c8_23 = arith.constant 8 : index
    %c0_24 = arith.constant 0 : index
    %c0_25 = arith.constant 0 : index
    %22 = vector.load %arg11[%c0_22, %c8_23, %c0_24, %c0_25] : memref<1x12x1x32xf32, #tpu.memory_space<vmem>>, vector<1x1x1x32xf32>
    %23 = vector.shape_cast %22 : vector<1x1x1x32xf32> to vector<1x32xf32>
    %24 = vector.broadcast %23 : vector<1x32xf32> to vector<8x32xf32>
    %25 = arith.addf %21, %24 : vector<8x32xf32>
    %26 = arith.truncf %25 : vector<8x32xf32> to vector<8x32xbf16>
    %27 = arith.truncf %11 : vector<8x32xf32> to vector<8x32xbf16>
    %28 = arith.truncf %18 : vector<8x32xf32> to vector<8x32xbf16>
    %cst_26 = arith.constant dense<0.000000e+00> : vector<8x8xf32>
    %29 = tpu.matmul %27, %28, %cst_26 {dimension_numbers = #tpu.dot_dimension_numbers<[1], [1], [0], [0], [0, 0, 1, 0], [], []>} : vector<8x32xbf16>, vector<8x32xbf16>, vector<8x8xf32> -> vector<8x8xf32>
    %c0_27 = arith.constant 0 : index
    %c1 = arith.constant 1 : index
    %c0_28 = arith.constant 0 : index
    %c0_29 = arith.constant 0 : index
    %30 = vector.load %arg10[%c0_27, %c1, %c0_28, %c0_29] : memref<1x12x128x32xbf16, #tpu.memory_space<vmem>>, vector<1x1x128x32xbf16>
    %31 = vector.shape_cast %30 : vector<1x1x128x32xbf16> to vector<128x32xbf16>
    %cst_30 = arith.constant dense<0.000000e+00> : vector<8x32xf32>
    %32 = tpu.matmul %4, %31, %cst_30 {dimension_numbers = #tpu.dot_dimension_numbers<[1], [0], [0], [1], [0, 0, 1, 1], [], []>} : vector<8x128xbf16>, vector<128x32xbf16>, vector<8x32xf32> -> vector<8x32xf32>
    %c0_31 = arith.constant 0 : index
    %c1_32 = arith.constant 1 : index
    %c0_33 = arith.constant 0 : index
    %c0_34 = arith.constant 0 : index
    %33 = vector.load %arg11[%c0_31, %c1_32, %c0_33, %c0_34] : memref<1x12x1x32xf32, #tpu.memory_space<vmem>>, vector<1x1x1x32xf32>
    %34 = vector.shape_cast %33 : vector<1x1x1x32xf32> to vector<1x32xf32>
    %35 = vector.broadcast %34 : vector<1x32xf32> to vector<8x32xf32>
    %36 = arith.addf %32, %35 : vector<8x32xf32>
    %c0_35 = arith.constant 0 : index
    %c5 = arith.constant 5 : index
    %c0_36 = arith.constant 0 : index
    %c0_37 = arith.constant 0 : index
    %37 = vector.load %arg10[%c0_35, %c5, %c0_36, %c0_37] : memref<1x12x128x32xbf16, #tpu.memory_space<vmem>>, vector<1x1x128x32xbf16>
    %38 = vector.shape_cast %37 : vector<1x1x128x32xbf16> to vector<128x32xbf16>
    %cst_38 = arith.constant dense<0.000000e+00> : vector<8x32xf32>
    %39 = tpu.matmul %4, %38, %cst_38 {dimension_numbers = #tpu.dot_dimension_numbers<[1], [0], [0], [1], [0, 0, 1, 1], [], []>} : vector<8x128xbf16>, vector<128x32xbf16>, vector<8x32xf32> -> vector<8x32xf32>
    %c0_39 = arith.constant 0 : index
    %c5_40 = arith.constant 5 : index
    %c0_41 = arith.constant 0 : index
    %c0_42 = arith.constant 0 : index
    %40 = vector.load %arg11[%c0_39, %c5_40, %c0_41, %c0_42] : memref<1x12x1x32xf32, #tpu.memory_space<vmem>>, vector<1x1x1x32xf32>
    %41 = vector.shape_cast %40 : vector<1x1x1x32xf32> to vector<1x32xf32>
    %42 = vector.broadcast %41 : vector<1x32xf32> to vector<8x32xf32>
    %43 = arith.addf %39, %42 : vector<8x32xf32>
    %c0_43 = arith.constant 0 : index
    %c9 = arith.constant 9 : index
    %c0_44 = arith.constant 0 : index
    %c0_45 = arith.constant 0 : index
    %44 = vector.load %arg10[%c0_43, %c9, %c0_44, %c0_45] : memref<1x12x128x32xbf16, #tpu.memory_space<vmem>>, vector<1x1x128x32xbf16>
    %45 = vector.shape_cast %44 : vector<1x1x128x32xbf16> to vector<128x32xbf16>
    %cst_46 = arith.constant dense<0.000000e+00> : vector<8x32xf32>
    %46 = tpu.matmul %4, %45, %cst_46 {dimension_numbers = #tpu.dot_dimension_numbers<[1], [0], [0], [1], [0, 0, 1, 1], [], []>} : vector<8x128xbf16>, vector<128x32xbf16>, vector<8x32xf32> -> vector<8x32xf32>
    %c0_47 = arith.constant 0 : index
    %c9_48 = arith.constant 9 : index
    %c0_49 = arith.constant 0 : index
    %c0_50 = arith.constant 0 : index
    %47 = vector.load %arg11[%c0_47, %c9_48, %c0_49, %c0_50] : memref<1x12x1x32xf32, #tpu.memory_space<vmem>>, vector<1x1x1x32xf32>
    %48 = vector.shape_cast %47 : vector<1x1x1x32xf32> to vector<1x32xf32>
    %49 = vector.broadcast %48 : vector<1x32xf32> to vector<8x32xf32>
    %50 = arith.addf %46, %49 : vector<8x32xf32>
    %51 = arith.truncf %50 : vector<8x32xf32> to vector<8x32xbf16>
    %52 = arith.truncf %36 : vector<8x32xf32> to vector<8x32xbf16>
    %53 = arith.truncf %43 : vector<8x32xf32> to vector<8x32xbf16>
    %cst_51 = arith.constant dense<0.000000e+00> : vector<8x8xf32>
    %54 = tpu.matmul %52, %53, %cst_51 {dimension_numbers = #tpu.dot_dimension_numbers<[1], [1], [0], [0], [0, 0, 1, 0], [], []>} : vector<8x32xbf16>, vector<8x32xbf16>, vector<8x8xf32> -> vector<8x8xf32>
    %c0_52 = arith.constant 0 : index
    %c2 = arith.constant 2 : index
    %c0_53 = arith.constant 0 : index
    %c0_54 = arith.constant 0 : index
    %55 = vector.load %arg10[%c0_52, %c2, %c0_53, %c0_54] : memref<1x12x128x32xbf16, #tpu.memory_space<vmem>>, vector<1x1x128x32xbf16>
    %56 = vector.shape_cast %55 : vector<1x1x128x32xbf16> to vector<128x32xbf16>
    %cst_55 = arith.constant dense<0.000000e+00> : vector<8x32xf32>
    %57 = tpu.matmul %4, %56, %cst_55 {dimension_numbers = #tpu.dot_dimension_numbers<[1], [0], [0], [1], [0, 0, 1, 1], [], []>} : vector<8x128xbf16>, vector<128x32xbf16>, vector<8x32xf32> -> vector<8x32xf32>
    %c0_56 = arith.constant 0 : index
    %c2_57 = arith.constant 2 : index
    %c0_58 = arith.constant 0 : index
    %c0_59 = arith.constant 0 : index
    %58 = vector.load %arg11[%c0_56, %c2_57, %c0_58, %c0_59] : memref<1x12x1x32xf32, #tpu.memory_space<vmem>>, vector<1x1x1x32xf32>
    %59 = vector.shape_cast %58 : vector<1x1x1x32xf32> to vector<1x32xf32>
    %60 = vector.broadcast %59 : vector<1x32xf32> to vector<8x32xf32>
    %61 = arith.addf %57, %60 : vector<8x32xf32>
    %c0_60 = arith.constant 0 : index
    %c6 = arith.constant 6 : index
    %c0_61 = arith.constant 0 : index
    %c0_62 = arith.constant 0 : index
    %62 = vector.load %arg10[%c0_60, %c6, %c0_61, %c0_62] : memref<1x12x128x32xbf16, #tpu.memory_space<vmem>>, vector<1x1x128x32xbf16>
    %63 = vector.shape_cast %62 : vector<1x1x128x32xbf16> to vector<128x32xbf16>
    %cst_63 = arith.constant dense<0.000000e+00> : vector<8x32xf32>
    %64 = tpu.matmul %4, %63, %cst_63 {dimension_numbers = #tpu.dot_dimension_numbers<[1], [0], [0], [1], [0, 0, 1, 1], [], []>} : vector<8x128xbf16>, vector<128x32xbf16>, vector<8x32xf32> -> vector<8x32xf32>
    %c0_64 = arith.constant 0 : index
    %c6_65 = arith.constant 6 : index
    %c0_66 = arith.constant 0 : index
    %c0_67 = arith.constant 0 : index
    %65 = vector.load %arg11[%c0_64, %c6_65, %c0_66, %c0_67] : memref<1x12x1x32xf32, #tpu.memory_space<vmem>>, vector<1x1x1x32xf32>
    %66 = vector.shape_cast %65 : vector<1x1x1x32xf32> to vector<1x32xf32>
    %67 = vector.broadcast %66 : vector<1x32xf32> to vector<8x32xf32>
    %68 = arith.addf %64, %67 : vector<8x32xf32>
    %c0_68 = arith.constant 0 : index
    %c10 = arith.constant 10 : index
    %c0_69 = arith.constant 0 : index
    %c0_70 = arith.constant 0 : index
    %69 = vector.load %arg10[%c0_68, %c10, %c0_69, %c0_70] : memref<1x12x128x32xbf16, #tpu.memory_space<vmem>>, vector<1x1x128x32xbf16>
    %70 = vector.shape_cast %69 : vector<1x1x128x32xbf16> to vector<128x32xbf16>
    %cst_71 = arith.constant dense<0.000000e+00> : vector<8x32xf32>
    %71 = tpu.matmul %4, %70, %cst_71 {dimension_numbers = #tpu.dot_dimension_numbers<[1], [0], [0], [1], [0, 0, 1, 1], [], []>} : vector<8x128xbf16>, vector<128x32xbf16>, vector<8x32xf32> -> vector<8x32xf32>
    %c0_72 = arith.constant 0 : index
    %c10_73 = arith.constant 10 : index
    %c0_74 = arith.constant 0 : index
    %c0_75 = arith.constant 0 : index
    %72 = vector.load %arg11[%c0_72, %c10_73, %c0_74, %c0_75] : memref<1x12x1x32xf32, #tpu.memory_space<vmem>>, vector<1x1x1x32xf32>
    %73 = vector.shape_cast %72 : vector<1x1x1x32xf32> to vector<1x32xf32>
    %74 = vector.broadcast %73 : vector<1x32xf32> to vector<8x32xf32>
    %75 = arith.addf %71, %74 : vector<8x32xf32>
    %76 = arith.truncf %75 : vector<8x32xf32> to vector<8x32xbf16>
    %77 = arith.truncf %61 : vector<8x32xf32> to vector<8x32xbf16>
    %78 = arith.truncf %68 : vector<8x32xf32> to vector<8x32xbf16>
    %cst_76 = arith.constant dense<0.000000e+00> : vector<8x8xf32>
    %79 = tpu.matmul %77, %78, %cst_76 {dimension_numbers = #tpu.dot_dimension_numbers<[1], [1], [0], [0], [0, 0, 1, 0], [], []>} : vector<8x32xbf16>, vector<8x32xbf16>, vector<8x8xf32> -> vector<8x8xf32>
    %c0_77 = arith.constant 0 : index
    %c3 = arith.constant 3 : index
    %c0_78 = arith.constant 0 : index
    %c0_79 = arith.constant 0 : index
    %80 = vector.load %arg10[%c0_77, %c3, %c0_78, %c0_79] : memref<1x12x128x32xbf16, #tpu.memory_space<vmem>>, vector<1x1x128x32xbf16>
    %81 = vector.shape_cast %80 : vector<1x1x128x32xbf16> to vector<128x32xbf16>
    %cst_80 = arith.constant dense<0.000000e+00> : vector<8x32xf32>
    %82 = tpu.matmul %4, %81, %cst_80 {dimension_numbers = #tpu.dot_dimension_numbers<[1], [0], [0], [1], [0, 0, 1, 1], [], []>} : vector<8x128xbf16>, vector<128x32xbf16>, vector<8x32xf32> -> vector<8x32xf32>
    %c0_81 = arith.constant 0 : index
    %c3_82 = arith.constant 3 : index
    %c0_83 = arith.constant 0 : index
    %c0_84 = arith.constant 0 : index
    %83 = vector.load %arg11[%c0_81, %c3_82, %c0_83, %c0_84] : memref<1x12x1x32xf32, #tpu.memory_space<vmem>>, vector<1x1x1x32xf32>
    %84 = vector.shape_cast %83 : vector<1x1x1x32xf32> to vector<1x32xf32>
    %85 = vector.broadcast %84 : vector<1x32xf32> to vector<8x32xf32>
    %86 = arith.addf %82, %85 : vector<8x32xf32>
    %c0_85 = arith.constant 0 : index
    %c7 = arith.constant 7 : index
    %c0_86 = arith.constant 0 : index
    %c0_87 = arith.constant 0 : index
    %87 = vector.load %arg10[%c0_85, %c7, %c0_86, %c0_87] : memref<1x12x128x32xbf16, #tpu.memory_space<vmem>>, vector<1x1x128x32xbf16>
    %88 = vector.shape_cast %87 : vector<1x1x128x32xbf16> to vector<128x32xbf16>
    %cst_88 = arith.constant dense<0.000000e+00> : vector<8x32xf32>
    %89 = tpu.matmul %4, %88, %cst_88 {dimension_numbers = #tpu.dot_dimension_numbers<[1], [0], [0], [1], [0, 0, 1, 1], [], []>} : vector<8x128xbf16>, vector<128x32xbf16>, vector<8x32xf32> -> vector<8x32xf32>
    %c0_89 = arith.constant 0 : index
    %c7_90 = arith.constant 7 : index
    %c0_91 = arith.constant 0 : index
    %c0_92 = arith.constant 0 : index
    %90 = vector.load %arg11[%c0_89, %c7_90, %c0_91, %c0_92] : memref<1x12x1x32xf32, #tpu.memory_space<vmem>>, vector<1x1x1x32xf32>
    %91 = vector.shape_cast %90 : vector<1x1x1x32xf32> to vector<1x32xf32>
    %92 = vector.broadcast %91 : vector<1x32xf32> to vector<8x32xf32>
    %93 = arith.addf %89, %92 : vector<8x32xf32>
    %c0_93 = arith.constant 0 : index
    %c11 = arith.constant 11 : index
    %c0_94 = arith.constant 0 : index
    %c0_95 = arith.constant 0 : index
    %94 = vector.load %arg10[%c0_93, %c11, %c0_94, %c0_95] : memref<1x12x128x32xbf16, #tpu.memory_space<vmem>>, vector<1x1x128x32xbf16>
    %95 = vector.shape_cast %94 : vector<1x1x128x32xbf16> to vector<128x32xbf16>
    %cst_96 = arith.constant dense<0.000000e+00> : vector<8x32xf32>
    %96 = tpu.matmul %4, %95, %cst_96 {dimension_numbers = #tpu.dot_dimension_numbers<[1], [0], [0], [1], [0, 0, 1, 1], [], []>} : vector<8x128xbf16>, vector<128x32xbf16>, vector<8x32xf32> -> vector<8x32xf32>
    %c0_97 = arith.constant 0 : index
    %c11_98 = arith.constant 11 : index
    %c0_99 = arith.constant 0 : index
    %c0_100 = arith.constant 0 : index
    %97 = vector.load %arg11[%c0_97, %c11_98, %c0_99, %c0_100] : memref<1x12x1x32xf32, #tpu.memory_space<vmem>>, vector<1x1x1x32xf32>
    %98 = vector.shape_cast %97 : vector<1x1x1x32xf32> to vector<1x32xf32>
    %99 = vector.broadcast %98 : vector<1x32xf32> to vector<8x32xf32>
    %100 = arith.addf %96, %99 : vector<8x32xf32>
    %101 = arith.truncf %100 : vector<8x32xf32> to vector<8x32xbf16>
    %102 = arith.truncf %86 : vector<8x32xf32> to vector<8x32xbf16>
    %103 = arith.truncf %93 : vector<8x32xf32> to vector<8x32xbf16>
    %cst_101 = arith.constant dense<0.000000e+00> : vector<8x8xf32>
    %104 = tpu.matmul %102, %103, %cst_101 {dimension_numbers = #tpu.dot_dimension_numbers<[1], [1], [0], [0], [0, 0, 1, 0], [], []>} : vector<8x32xbf16>, vector<8x32xbf16>, vector<8x8xf32> -> vector<8x8xf32>
    %105 = tpu.concatenate %29, %54, %79, %104 in 0 : vector<8x8xf32>, vector<8x8xf32>, vector<8x8xf32>, vector<8x8xf32> -> vector<32x8xf32>
    %cst_102 = arith.constant dense<0xFF800000> : vector<32xf32>
    %106 = vector.multi_reduction <maximumf>, %105, %cst_102 [1] : vector<32x8xf32> to vector<32xf32>
    %107 = vector.shape_cast %106 : vector<32xf32> to vector<32x1xf32>
    %108 = vector.broadcast %107 : vector<32x1xf32> to vector<32x8xf32>
    %109 = arith.subf %105, %108 : vector<32x8xf32>
    %110 = math.exp %109 : vector<32x8xf32>
    %cst_103 = arith.constant dense<0.000000e+00> : vector<32xf32>
    %111 = vector.multi_reduction <add>, %110, %cst_103 [1] : vector<32x8xf32> to vector<32xf32>
    %112 = vector.shape_cast %111 : vector<32xf32> to vector<32x1xf32>
    %113 = tpu.reciprocal %112 {approx = true} : vector<32x1xf32> -> vector<32x1xf32>
    %114 = vector.broadcast %113 : vector<32x1xf32> to vector<32x8xf32>
    %115 = arith.mulf %110, %114 : vector<32x8xf32>
    %116 = arith.truncf %115 : vector<32x8xf32> to vector<32x8xbf16>
    %c0_104 = arith.constant 0 : index
    %c0_105 = arith.constant 0 : index
    %c0_106 = arith.constant 0 : index
    %117 = vector.load %arg13[%c0_104, %c0_105, %c0_106] : memref<1x1x128xf32, #tpu.memory_space<vmem>>, vector<1x1x128xf32>
    %118 = vector.shape_cast %117 : vector<1x1x128xf32> to vector<1x128xf32>
    %119 = vector.shape_cast %118 : vector<1x128xf32> to vector<1x128xf32>
    %120 = vector.broadcast %119 : vector<1x128xf32> to vector<8x128xf32>
    %121 = vector.extract_strided_slice %116 {offsets = [0, 0], sizes = [8, 8], strides = [1, 1]} : vector<32x8xbf16> to vector<8x8xbf16>
    %cst_107 = arith.constant dense<0.000000e+00> : vector<8x32xf32>
    %122 = tpu.matmul %121, %26, %cst_107 {dimension_numbers = #tpu.dot_dimension_numbers<[1], [0], [0], [1], [0, 0, 1, 1], [], []>} : vector<8x8xbf16>, vector<8x32xbf16>, vector<8x32xf32> -> vector<8x32xf32>
    %123 = arith.truncf %122 : vector<8x32xf32> to vector<8x32xbf16>
    %c0_108 = arith.constant 0 : index
    %c0_109 = arith.constant 0 : index
    %c0_110 = arith.constant 0 : index
    %c0_111 = arith.constant 0 : index
    %124 = vector.load %arg12[%c0_108, %c0_109, %c0_110, %c0_111] : memref<1x4x32x128xbf16, #tpu.memory_space<vmem>>, vector<1x1x32x128xbf16>
    %125 = vector.shape_cast %124 : vector<1x1x32x128xbf16> to vector<32x128xbf16>
    %cst_112 = arith.constant dense<0.000000e+00> : vector<8x128xf32>
    %126 = tpu.matmul %123, %125, %cst_112 {dimension_numbers = #tpu.dot_dimension_numbers<[1], [0], [0], [1], [0, 0, 1, 1], [], []>} : vector<8x32xbf16>, vector<32x128xbf16>, vector<8x128xf32> -> vector<8x128xf32>
    %127 = arith.addf %120, %126 : vector<8x128xf32>
    %128 = vector.extract_strided_slice %116 {offsets = [8, 0], sizes = [8, 8], strides = [1, 1]} : vector<32x8xbf16> to vector<8x8xbf16>
    %cst_113 = arith.constant dense<0.000000e+00> : vector<8x32xf32>
    %129 = tpu.matmul %128, %51, %cst_113 {dimension_numbers = #tpu.dot_dimension_numbers<[1], [0], [0], [1], [0, 0, 1, 1], [], []>} : vector<8x8xbf16>, vector<8x32xbf16>, vector<8x32xf32> -> vector<8x32xf32>
    %130 = arith.truncf %129 : vector<8x32xf32> to vector<8x32xbf16>
    %c0_114 = arith.constant 0 : index
    %c1_115 = arith.constant 1 : index
    %c0_116 = arith.constant 0 : index
    %c0_117 = arith.constant 0 : index
    %131 = vector.load %arg12[%c0_114, %c1_115, %c0_116, %c0_117] : memref<1x4x32x128xbf16, #tpu.memory_space<vmem>>, vector<1x1x32x128xbf16>
    %132 = vector.shape_cast %131 : vector<1x1x32x128xbf16> to vector<32x128xbf16>
    %cst_118 = arith.constant dense<0.000000e+00> : vector<8x128xf32>
    %133 = tpu.matmul %130, %132, %cst_118 {dimension_numbers = #tpu.dot_dimension_numbers<[1], [0], [0], [1], [0, 0, 1, 1], [], []>} : vector<8x32xbf16>, vector<32x128xbf16>, vector<8x128xf32> -> vector<8x128xf32>
    %134 = arith.addf %127, %133 : vector<8x128xf32>
    %135 = vector.extract_strided_slice %116 {offsets = [16, 0], sizes = [8, 8], strides = [1, 1]} : vector<32x8xbf16> to vector<8x8xbf16>
    %cst_119 = arith.constant dense<0.000000e+00> : vector<8x32xf32>
    %136 = tpu.matmul %135, %76, %cst_119 {dimension_numbers = #tpu.dot_dimension_numbers<[1], [0], [0], [1], [0, 0, 1, 1], [], []>} : vector<8x8xbf16>, vector<8x32xbf16>, vector<8x32xf32> -> vector<8x32xf32>
    %137 = arith.truncf %136 : vector<8x32xf32> to vector<8x32xbf16>
    %c0_120 = arith.constant 0 : index
    %c2_121 = arith.constant 2 : index
    %c0_122 = arith.constant 0 : index
    %c0_123 = arith.constant 0 : index
    %138 = vector.load %arg12[%c0_120, %c2_121, %c0_122, %c0_123] : memref<1x4x32x128xbf16, #tpu.memory_space<vmem>>, vector<1x1x32x128xbf16>
    %139 = vector.shape_cast %138 : vector<1x1x32x128xbf16> to vector<32x128xbf16>
    %cst_124 = arith.constant dense<0.000000e+00> : vector<8x128xf32>
    %140 = tpu.matmul %137, %139, %cst_124 {dimension_numbers = #tpu.dot_dimension_numbers<[1], [0], [0], [1], [0, 0, 1, 1], [], []>} : vector<8x32xbf16>, vector<32x128xbf16>, vector<8x128xf32> -> vector<8x128xf32>
    %141 = arith.addf %134, %140 : vector<8x128xf32>
    %142 = vector.extract_strided_slice %116 {offsets = [24, 0], sizes = [8, 8], strides = [1, 1]} : vector<32x8xbf16> to vector<8x8xbf16>
    %cst_125 = arith.constant dense<0.000000e+00> : vector<8x32xf32>
    %143 = tpu.matmul %142, %101, %cst_125 {dimension_numbers = #tpu.dot_dimension_numbers<[1], [0], [0], [1], [0, 0, 1, 1], [], []>} : vector<8x8xbf16>, vector<8x32xbf16>, vector<8x32xf32> -> vector<8x32xf32>
    %144 = arith.truncf %143 : vector<8x32xf32> to vector<8x32xbf16>
    %c0_126 = arith.constant 0 : index
    %c3_127 = arith.constant 3 : index
    %c0_128 = arith.constant 0 : index
    %c0_129 = arith.constant 0 : index
    %145 = vector.load %arg12[%c0_126, %c3_127, %c0_128, %c0_129] : memref<1x4x32x128xbf16, #tpu.memory_space<vmem>>, vector<1x1x32x128xbf16>
    %146 = vector.shape_cast %145 : vector<1x1x32x128xbf16> to vector<32x128xbf16>
    %cst_130 = arith.constant dense<0.000000e+00> : vector<8x128xf32>
    %147 = tpu.matmul %144, %146, %cst_130 {dimension_numbers = #tpu.dot_dimension_numbers<[1], [0], [0], [1], [0, 0, 1, 1], [], []>} : vector<8x32xbf16>, vector<32x128xbf16>, vector<8x128xf32> -> vector<8x128xf32>
    %148 = arith.addf %141, %147 : vector<8x128xf32>
    %149 = arith.addf %3, %148 : vector<8x128xf32>
    %c0_131 = arith.constant 0 : index
    %c0_132 = arith.constant 0 : index
    %c0_133 = arith.constant 0 : index
    %150 = vector.load %arg14[%c0_131, %c0_132, %c0_133] : memref<1x1x128xf32, #tpu.memory_space<vmem>>, vector<1x1x128xf32>
    %151 = vector.shape_cast %150 : vector<1x1x128xf32> to vector<1x128xf32>
    %c0_134 = arith.constant 0 : index
    %c0_135 = arith.constant 0 : index
    %c0_136 = arith.constant 0 : index
    %152 = vector.load %arg15[%c0_134, %c0_135, %c0_136] : memref<1x1x128xf32, #tpu.memory_space<vmem>>, vector<1x1x128xf32>
    %153 = vector.shape_cast %152 : vector<1x1x128xf32> to vector<1x128xf32>
    %cst_137 = arith.constant dense<0.000000e+00> : vector<8xf32>
    %154 = vector.multi_reduction <add>, %149, %cst_137 [1] : vector<8x128xf32> to vector<8xf32>
    %155 = vector.shape_cast %154 : vector<8xf32> to vector<8x1xf32>
    %cst_138 = arith.constant 1.280000e+02 : f32
    %156 = vector.broadcast %cst_138 : f32 to vector<8x1xf32>
    %157 = arith.divf %155, %156 : vector<8x1xf32>
    %158 = vector.broadcast %157 : vector<8x1xf32> to vector<8x128xf32>
    %159 = arith.subf %149, %158 : vector<8x128xf32>
    %160 = arith.mulf %159, %159 : vector<8x128xf32>
    %cst_139 = arith.constant dense<0.000000e+00> : vector<8xf32>
    %161 = vector.multi_reduction <add>, %160, %cst_139 [1] : vector<8x128xf32> to vector<8xf32>
    %162 = vector.shape_cast %161 : vector<8xf32> to vector<8x1xf32>
    %cst_140 = arith.constant 1.280000e+02 : f32
    %163 = vector.broadcast %cst_140 : f32 to vector<8x1xf32>
    %164 = arith.divf %162, %163 : vector<8x1xf32>
    %cst_141 = arith.constant 9.99999974E-6 : f32
    %165 = vector.broadcast %cst_141 : f32 to vector<8x1xf32>
    %166 = arith.addf %164, %165 : vector<8x1xf32>
    %167 = math.rsqrt %166 : vector<8x1xf32>
    %168 = vector.broadcast %167 : vector<8x1xf32> to vector<8x128xf32>
    %169 = arith.mulf %159, %168 : vector<8x128xf32>
    %170 = vector.broadcast %151 : vector<1x128xf32> to vector<8x128xf32>
    %171 = arith.mulf %169, %170 : vector<8x128xf32>
    %172 = vector.broadcast %153 : vector<1x128xf32> to vector<8x128xf32>
    %173 = arith.addf %171, %172 : vector<8x128xf32>
    %174 = arith.truncf %173 : vector<8x128xf32> to vector<8x128xbf16>
    %c0_142 = arith.constant 0 : index
    %c0_143 = arith.constant 0 : index
    %c0_144 = arith.constant 0 : index
    %175 = vector.load %arg16[%c0_142, %c0_143, %c0_144] : memref<1x128x256xbf16, #tpu.memory_space<vmem>>, vector<1x128x256xbf16>
    %176 = vector.shape_cast %175 : vector<1x128x256xbf16> to vector<128x256xbf16>
    %cst_145 = arith.constant dense<0.000000e+00> : vector<8x256xf32>
    %177 = tpu.matmul %174, %176, %cst_145 {dimension_numbers = #tpu.dot_dimension_numbers<[1], [0], [0], [1], [0, 0, 1, 1], [], []>} : vector<8x128xbf16>, vector<128x256xbf16>, vector<8x256xf32> -> vector<8x256xf32>
    %c0_146 = arith.constant 0 : index
    %c0_147 = arith.constant 0 : index
    %c0_148 = arith.constant 0 : index
    %178 = vector.load %arg17[%c0_146, %c0_147, %c0_148] : memref<1x1x256xf32, #tpu.memory_space<vmem>>, vector<1x1x256xf32>
    %179 = vector.shape_cast %178 : vector<1x1x256xf32> to vector<1x256xf32>
    %180 = vector.broadcast %179 : vector<1x256xf32> to vector<8x256xf32>
    %181 = arith.addf %177, %180 : vector<8x256xf32>
    %cst_149 = arith.constant 0.000000e+00 : f32
    %182 = vector.broadcast %cst_149 : f32 to vector<8x256xf32>
    %183 = arith.maximumf %181, %182 : vector<8x256xf32>
    %184 = arith.truncf %183 : vector<8x256xf32> to vector<8x256xbf16>
    %c0_150 = arith.constant 0 : index
    %c0_151 = arith.constant 0 : index
    %c0_152 = arith.constant 0 : index
    %185 = vector.load %arg18[%c0_150, %c0_151, %c0_152] : memref<1x256x128xbf16, #tpu.memory_space<vmem>>, vector<1x256x128xbf16>
    %186 = vector.shape_cast %185 : vector<1x256x128xbf16> to vector<256x128xbf16>
    %cst_153 = arith.constant dense<0.000000e+00> : vector<8x128xf32>
    %187 = tpu.matmul %184, %186, %cst_153 {dimension_numbers = #tpu.dot_dimension_numbers<[1], [0], [0], [1], [0, 0, 1, 1], [], []>} : vector<8x256xbf16>, vector<256x128xbf16>, vector<8x128xf32> -> vector<8x128xf32>
    %c0_154 = arith.constant 0 : index
    %c0_155 = arith.constant 0 : index
    %c0_156 = arith.constant 0 : index
    %188 = vector.load %arg19[%c0_154, %c0_155, %c0_156] : memref<1x1x128xf32, #tpu.memory_space<vmem>>, vector<1x1x128xf32>
    %189 = vector.shape_cast %188 : vector<1x1x128xf32> to vector<1x128xf32>
    %190 = vector.broadcast %189 : vector<1x128xf32> to vector<8x128xf32>
    %191 = arith.addf %187, %190 : vector<8x128xf32>
    %192 = arith.addf %173, %191 : vector<8x128xf32>
    %c0_157 = arith.constant 0 : index
    %c0_158 = arith.constant 0 : index
    %c0_159 = arith.constant 0 : index
    %193 = vector.load %arg20[%c0_157, %c0_158, %c0_159] : memref<1x1x128xf32, #tpu.memory_space<vmem>>, vector<1x1x128xf32>
    %194 = vector.shape_cast %193 : vector<1x1x128xf32> to vector<1x128xf32>
    %c0_160 = arith.constant 0 : index
    %c0_161 = arith.constant 0 : index
    %c0_162 = arith.constant 0 : index
    %195 = vector.load %arg21[%c0_160, %c0_161, %c0_162] : memref<1x1x128xf32, #tpu.memory_space<vmem>>, vector<1x1x128xf32>
    %196 = vector.shape_cast %195 : vector<1x1x128xf32> to vector<1x128xf32>
    %cst_163 = arith.constant dense<0.000000e+00> : vector<8xf32>
    %197 = vector.multi_reduction <add>, %192, %cst_163 [1] : vector<8x128xf32> to vector<8xf32>
    %198 = vector.shape_cast %197 : vector<8xf32> to vector<8x1xf32>
    %cst_164 = arith.constant 1.280000e+02 : f32
    %199 = vector.broadcast %cst_164 : f32 to vector<8x1xf32>
    %200 = arith.divf %198, %199 : vector<8x1xf32>
    %201 = vector.broadcast %200 : vector<8x1xf32> to vector<8x128xf32>
    %202 = arith.subf %192, %201 : vector<8x128xf32>
    %203 = arith.mulf %202, %202 : vector<8x128xf32>
    %cst_165 = arith.constant dense<0.000000e+00> : vector<8xf32>
    %204 = vector.multi_reduction <add>, %203, %cst_165 [1] : vector<8x128xf32> to vector<8xf32>
    %205 = vector.shape_cast %204 : vector<8xf32> to vector<8x1xf32>
    %cst_166 = arith.constant 1.280000e+02 : f32
    %206 = vector.broadcast %cst_166 : f32 to vector<8x1xf32>
    %207 = arith.divf %205, %206 : vector<8x1xf32>
    %cst_167 = arith.constant 9.99999974E-6 : f32
    %208 = vector.broadcast %cst_167 : f32 to vector<8x1xf32>
    %209 = arith.addf %207, %208 : vector<8x1xf32>
    %210 = math.rsqrt %209 : vector<8x1xf32>
    %211 = vector.broadcast %210 : vector<8x1xf32> to vector<8x128xf32>
    %212 = arith.mulf %202, %211 : vector<8x128xf32>
    %213 = vector.broadcast %194 : vector<1x128xf32> to vector<8x128xf32>
    %214 = arith.mulf %212, %213 : vector<8x128xf32>
    %215 = vector.broadcast %196 : vector<1x128xf32> to vector<8x128xf32>
    %216 = arith.addf %214, %215 : vector<8x128xf32>
    %c0_168 = arith.constant 0 : index
    %c0_169 = arith.constant 0 : index
    %217 = vector.load %arg23[%c0_168, %c0_169] : memref<8x128xf32, #tpu.memory_space<vmem>>, vector<8x128xf32>
    tpu.vector_store %arg23[%c0_168, %c0_169], %216 {strides = array<i32>} : memref<8x128xf32, #tpu.memory_space<vmem>>, vector<8x128xf32>,
    %c1_i32 = arith.constant 1 : i32
    %218 = arith.cmpi eq, %arg1, %c1_i32 : i32
    %219 = arith.extui %218 : i1 to i32
    %c0_i32_170 = arith.constant 0 : i32
    %220 = arith.cmpi ne, %219, %c0_i32_170 : i32
    scf.if %220 {
      %c0_171 = arith.constant 0 : index
      %c0_172 = arith.constant 0 : index
      %221 = vector.load %arg23[%c0_171, %c0_172] : memref<8x128xf32, #tpu.memory_space<vmem>>, vector<8x128xf32>
      %c0_173 = arith.constant 0 : index
      %c0_174 = arith.constant 0 : index
      %222 = vector.load %arg6[%c0_173, %c0_174] : memref<1x128xf32, #tpu.memory_space<vmem>>, vector<1x128xf32>
      %c0_175 = arith.constant 0 : index
      %c0_176 = arith.constant 0 : index
      %223 = vector.load %arg7[%c0_175, %c0_176] : memref<1x128xf32, #tpu.memory_space<vmem>>, vector<1x128xf32>
      %cst_177 = arith.constant dense<0.000000e+00> : vector<8xf32>
      %224 = vector.multi_reduction <add>, %221, %cst_177 [1] : vector<8x128xf32> to vector<8xf32>
      %225 = vector.shape_cast %224 : vector<8xf32> to vector<8x1xf32>
      %cst_178 = arith.constant 1.280000e+02 : f32
      %226 = vector.broadcast %cst_178 : f32 to vector<8x1xf32>
      %227 = arith.divf %225, %226 : vector<8x1xf32>
      %228 = vector.broadcast %227 : vector<8x1xf32> to vector<8x128xf32>
      %229 = arith.subf %221, %228 : vector<8x128xf32>
      %230 = arith.mulf %229, %229 : vector<8x128xf32>
      %cst_179 = arith.constant dense<0.000000e+00> : vector<8xf32>
      %231 = vector.multi_reduction <add>, %230, %cst_179 [1] : vector<8x128xf32> to vector<8xf32>
      %232 = vector.shape_cast %231 : vector<8xf32> to vector<8x1xf32>
      %cst_180 = arith.constant 1.280000e+02 : f32
      %233 = vector.broadcast %cst_180 : f32 to vector<8x1xf32>
      %234 = arith.divf %232, %233 : vector<8x1xf32>
      %cst_181 = arith.constant 9.99999974E-6 : f32
      %235 = vector.broadcast %cst_181 : f32 to vector<8x1xf32>
      %236 = arith.addf %234, %235 : vector<8x1xf32>
      %237 = math.rsqrt %236 : vector<8x1xf32>
      %238 = vector.broadcast %237 : vector<8x1xf32> to vector<8x128xf32>
      %239 = arith.mulf %229, %238 : vector<8x128xf32>
      %240 = vector.broadcast %222 : vector<1x128xf32> to vector<8x128xf32>
      %241 = arith.mulf %239, %240 : vector<8x128xf32>
      %242 = vector.broadcast %223 : vector<1x128xf32> to vector<8x128xf32>
      %243 = arith.addf %241, %242 : vector<8x128xf32>
      %244 = arith.truncf %243 : vector<8x128xf32> to vector<8x128xbf16>
      %c0_182 = arith.constant 0 : index
      %c0_183 = arith.constant 0 : index
      %245 = vector.load %arg8[%c0_182, %c0_183] : memref<128x128xbf16, #tpu.memory_space<vmem>>, vector<128x128xbf16>
      %cst_184 = arith.constant dense<0.000000e+00> : vector<8x128xf32>
      %246 = tpu.matmul %244, %245, %cst_184 {dimension_numbers = #tpu.dot_dimension_numbers<[1], [0], [0], [1], [0, 0, 1, 1], [], []>} : vector<8x128xbf16>, vector<128x128xbf16>, vector<8x128xf32> -> vector<8x128xf32>
      %c0_185 = arith.constant 0 : index
      %c0_186 = arith.constant 0 : index
      %247 = vector.load %arg9[%c0_185, %c0_186] : memref<1x128xf32, #tpu.memory_space<vmem>>, vector<1x128xf32>
      %248 = vector.broadcast %247 : vector<1x128xf32> to vector<8x128xf32>
      %249 = arith.addf %246, %248 : vector<8x128xf32>
      %250 = tpu.iota {dimensions = array<i32: 1>} : vector<8x128xi32>
      %cst_187 = arith.constant dense<0xFF800000> : vector<8xf32>
      %251 = vector.multi_reduction <maximumf>, %249, %cst_187 [1] : vector<8x128xf32> to vector<8xf32>
      %252 = vector.shape_cast %251 : vector<8xf32> to vector<8x1xf32>
      %253 = vector.broadcast %252 : vector<8x1xf32> to vector<8x128xf32>
      %254 = arith.cmpf oge, %249, %253 : vector<8x128xf32>
      %c128_i32 = arith.constant 128 : i32
      %255 = vector.broadcast %c128_i32 : i32 to vector<8x128xi32>
      %256 = arith.select %254, %250, %255 : vector<8x128xi1>, vector<8x128xi32>
      %cst_188 = arith.constant dense<2147483647> : vector<8xi32>
      %257 = vector.multi_reduction <minsi>, %256, %cst_188 [1] : vector<8x128xi32> to vector<8xi32>
      %258 = vector.shape_cast %257 : vector<8xi32> to vector<8x1xi32>
      %259 = vector.shape_cast %258 : vector<8x1xi32> to vector<8x1xi32>
      %260 = vector.broadcast %259 : vector<8x1xi32> to vector<8x128xi32>
      %c0_189 = arith.constant 0 : index
      %c0_190 = arith.constant 0 : index
      %c0_191 = arith.constant 0 : index
      %261 = vector.load %arg22[%c0_189, %c0_190, %c0_191] : memref<1x8x128xi32, #tpu.memory_space<vmem>>, vector<1x8x128xi32>
      %262 = vector.shape_cast %261 : vector<1x8x128xi32> to vector<8x128xi32>
      %263 = vector.shape_cast %260 : vector<8x128xi32> to vector<1x8x128xi32>
      tpu.vector_store %arg22[%c0_189, %c0_190, %c0_191], %263 {strides = array<i32>} : memref<1x8x128xi32, #tpu.memory_space<vmem>>, vector<1x8x128xi32>,
    } else {
    }
    return
  }
  func.func @transform_0(%arg0: i32, %arg1: i32) -> (i32, i32, i32) {
    %c0_i32 = arith.constant 0 : i32
    %c0_i32_0 = arith.constant 0 : i32
    %c0_i32_1 = arith.constant 0 : i32
    return %arg0, %c0_i32, %c0_i32_0 : i32, i32, i32
  }
  func.func @transform_1(%arg0: i32, %arg1: i32) -> (i32, i32) {
    %c0_i32 = arith.constant 0 : i32
    %c0_i32_0 = arith.constant 0 : i32
    %c0_i32_1 = arith.constant 0 : i32
    return %c0_i32, %c0_i32_0 : i32, i32
  }
  func.func @transform_2(%arg0: i32, %arg1: i32) -> (i32, i32) {
    %c0_i32 = arith.constant 0 : i32
    %c0_i32_0 = arith.constant 0 : i32
    %c0_i32_1 = arith.constant 0 : i32
    return %c0_i32, %c0_i32_0 : i32, i32
  }
  func.func @transform_3(%arg0: i32, %arg1: i32) -> (i32, i32) {
    %c0_i32 = arith.constant 0 : i32
    %c0_i32_0 = arith.constant 0 : i32
    %c0_i32_1 = arith.constant 0 : i32
    return %c0_i32, %c0_i32_0 : i32, i32
  }
  func.func @transform_4(%arg0: i32, %arg1: i32) -> (i32, i32) {
    %c0_i32 = arith.constant 0 : i32
    %c0_i32_0 = arith.constant 0 : i32
    %c0_i32_1 = arith.constant 0 : i32
    return %c0_i32, %c0_i32_0 : i32, i32
  }
  func.func @transform_5(%arg0: i32, %arg1: i32) -> (i32, i32) {
    %c0_i32 = arith.constant 0 : i32
    %c0_i32_0 = arith.constant 0 : i32
    %c0_i32_1 = arith.constant 0 : i32
    return %c0_i32, %c0_i32_0 : i32, i32
  }
  func.func @transform_6(%arg0: i32, %arg1: i32) -> (i32, i32) {
    %c0_i32 = arith.constant 0 : i32
    %c0_i32_0 = arith.constant 0 : i32
    %c0_i32_1 = arith.constant 0 : i32
    return %c0_i32, %c0_i32_0 : i32, i32
  }
  func.func @transform_7(%arg0: i32, %arg1: i32) -> (i32, i32) {
    %c0_i32 = arith.constant 0 : i32
    %c0_i32_0 = arith.constant 0 : i32
    %c0_i32_1 = arith.constant 0 : i32
    return %c0_i32, %c0_i32_0 : i32, i32
  }
  func.func @transform_8(%arg0: i32, %arg1: i32) -> (i32, i32, i32, i32) {
    %c0_i32 = arith.constant 0 : i32
    %c0_i32_0 = arith.constant 0 : i32
    %c0_i32_1 = arith.constant 0 : i32
    %c0_i32_2 = arith.constant 0 : i32
    return %arg1, %c0_i32, %c0_i32_0, %c0_i32_1 : i32, i32, i32, i32
  }
  func.func @transform_9(%arg0: i32, %arg1: i32) -> (i32, i32, i32, i32) {
    %c0_i32 = arith.constant 0 : i32
    %c0_i32_0 = arith.constant 0 : i32
    %c0_i32_1 = arith.constant 0 : i32
    %c0_i32_2 = arith.constant 0 : i32
    return %arg1, %c0_i32, %c0_i32_0, %c0_i32_1 : i32, i32, i32, i32
  }
  func.func @transform_10(%arg0: i32, %arg1: i32) -> (i32, i32, i32, i32) {
    %c0_i32 = arith.constant 0 : i32
    %c0_i32_0 = arith.constant 0 : i32
    %c0_i32_1 = arith.constant 0 : i32
    %c0_i32_2 = arith.constant 0 : i32
    return %arg1, %c0_i32, %c0_i32_0, %c0_i32_1 : i32, i32, i32, i32
  }
  func.func @transform_11(%arg0: i32, %arg1: i32) -> (i32, i32, i32) {
    %c0_i32 = arith.constant 0 : i32
    %c0_i32_0 = arith.constant 0 : i32
    %c0_i32_1 = arith.constant 0 : i32
    return %arg1, %c0_i32, %c0_i32_0 : i32, i32, i32
  }
  func.func @transform_12(%arg0: i32, %arg1: i32) -> (i32, i32, i32) {
    %c0_i32 = arith.constant 0 : i32
    %c0_i32_0 = arith.constant 0 : i32
    %c0_i32_1 = arith.constant 0 : i32
    return %arg1, %c0_i32, %c0_i32_0 : i32, i32, i32
  }
  func.func @transform_13(%arg0: i32, %arg1: i32) -> (i32, i32, i32) {
    %c0_i32 = arith.constant 0 : i32
    %c0_i32_0 = arith.constant 0 : i32
    %c0_i32_1 = arith.constant 0 : i32
    return %arg1, %c0_i32, %c0_i32_0 : i32, i32, i32
  }
  func.func @transform_14(%arg0: i32, %arg1: i32) -> (i32, i32, i32) {
    %c0_i32 = arith.constant 0 : i32
    %c0_i32_0 = arith.constant 0 : i32
    %c0_i32_1 = arith.constant 0 : i32
    return %arg1, %c0_i32, %c0_i32_0 : i32, i32, i32
  }
  func.func @transform_15(%arg0: i32, %arg1: i32) -> (i32, i32, i32) {
    %c0_i32 = arith.constant 0 : i32
    %c0_i32_0 = arith.constant 0 : i32
    %c0_i32_1 = arith.constant 0 : i32
    return %arg1, %c0_i32, %c0_i32_0 : i32, i32, i32
  }
  func.func @transform_16(%arg0: i32, %arg1: i32) -> (i32, i32, i32) {
    %c0_i32 = arith.constant 0 : i32
    %c0_i32_0 = arith.constant 0 : i32
    %c0_i32_1 = arith.constant 0 : i32
    return %arg1, %c0_i32, %c0_i32_0 : i32, i32, i32
  }
  func.func @transform_17(%arg0: i32, %arg1: i32) -> (i32, i32, i32) {
    %c0_i32 = arith.constant 0 : i32
    %c0_i32_0 = arith.constant 0 : i32
    %c0_i32_1 = arith.constant 0 : i32
    return %arg1, %c0_i32, %c0_i32_0 : i32, i32, i32
  }
  func.func @transform_18(%arg0: i32, %arg1: i32) -> (i32, i32, i32) {
    %c0_i32 = arith.constant 0 : i32
    %c0_i32_0 = arith.constant 0 : i32
    %c0_i32_1 = arith.constant 0 : i32
    return %arg1, %c0_i32, %c0_i32_0 : i32, i32, i32
  }
  func.func @transform_19(%arg0: i32, %arg1: i32) -> (i32, i32, i32) {
    %c0_i32 = arith.constant 0 : i32
    %c0_i32_0 = arith.constant 0 : i32
    %c0_i32_1 = arith.constant 0 : i32
    return %arg1, %c0_i32, %c0_i32_0 : i32, i32, i32
  }
  func.func @transform_20(%arg0: i32, %arg1: i32) -> (i32, i32, i32) {
    %c0_i32 = arith.constant 0 : i32
    %c0_i32_0 = arith.constant 0 : i32
    %c0_i32_1 = arith.constant 0 : i32
    return %arg0, %c0_i32, %c0_i32_0 : i32, i32, i32
  }
}

</mosaic_0001>

<bundles_post_ra>
// kernel: encoder_respeller_forward.1
= control target key start
LH: loop header
LB: loop body
LE: loop exit
PB: predicated region body
PF: predicated region fallthrough
CT: control target
= control target key end

     0   :  { %s5022_s22 = smov 0   ;;  %s5024_s23 = smov 0   ;;  %s5603_s0 = inlined_call_operand.vmem [shape: bf16[2,8,64], index: 0, kind: input, shape index: {}]   ;;  %s5604_s1 = inlined_call_operand.vmem [shape: f32[8,128], index: 1, kind: input, shape index: {}]   ;;  %s5605_s2 = inlined_call_operand.vmem [shape: bf16[64,128], index: 2, kind: input, shape index: {}]   ;;  %s5606_s3 = inlined_call_operand.vmem [shape: f32[1,128], index: 3, kind: input, shape index: {}]   ;;  %s5607_s4 = inlined_call_operand.vmem [shape: f32[1,128], index: 4, kind: input, shape index: {}]   ;;  %s5608_s5 = inlined_call_operand.vmem [shape: f32[1,128], index: 5, kind: input, shape index: {}]   ;;  %s5609_s6 = inlined_call_operand.vmem [shape: bf16[128,128], index: 6, kind: input, shape index: {}]   ;;  %s5610_s7 = inlined_call_operand.vmem [shape: f32[1,128], index: 7, kind: input, shape index: {}]   ;;  %s5611_s8 = inlined_call_operand.vmem [shape: bf16[2,12,128,32], index: 8, kind: input, shape index: {}]   ;;  %s5612_s9 = inlined_call_operand.vmem [shape: f32[2,12,1,32], index: 9, kind: input, shape index: {}]   ;;  %s5613_s10 = inlined_call_operand.vmem [shape: bf16[2,4,32,128], index: 10, kind: input, shape index: {}]   ;;  %s5614_s11 = inlined_call_operand.vmem [shape: f32[2,1,128], index: 11, kind: input, shape index: {}]   ;;  %s5615_s12 = inlined_call_operand.vmem [shape: f32[2,1,128], index: 12, kind: input, shape index: {}]   ;;  %s5616_s13 = inlined_call_operand.vmem [shape: f32[2,1,128], index: 13, kind: input, shape index: {}]   ;;  %s5617_s14 = inlined_call_operand.vmem [shape: bf16[2,128,256], index: 14, kind: input, shape index: {}]   ;;  %s5618_s15 = inlined_call_operand.vmem [shape: f32[2,1,256], index: 15, kind: input, shape index: {}]   ;;  %s5619_s16 = inlined_call_operand.vmem [shape: bf16[2,256,128], index: 16, kind: input, shape index: {}]   ;;  %s5620_s17 = inlined_call_operand.vmem [shape: f32[2,1,128], index: 17, kind: input, shape index: {}]   ;;  %s5621_s18 = inlined_call_operand.vmem [shape: f32[2,1,128], index: 18, kind: input, shape index: {}]   ;;  %s5622_s19 = inlined_call_operand.vmem [shape: f32[2,1,128], index: 19, kind: input, shape index: {}]   ;;  %s5623_s20 = inlined_call_operand.vmem [shape: s32[2,8,128], index: 20, kind: output, shape index: {}]  }
   0x1   :  { %5630 = sst [smem:[#allocation10_spill]] %s5603_s0  ;;  %s5026_s24 = smov 0  }
   0x2   :  { %5631 = sst [smem:[#allocation11_spill]] %s5604_s1  ;;  %s5020_s1 = smov 0  }
   0x3   :  { %5632 = sst [smem:[#allocation12_spill]] %s5605_s2  ;;  %s5028_s2 = smov 0  }
   0x4   :  { %5633 = sst [smem:[#allocation13_spill]] %s5606_s3 }
   0x5   :  { %5634 = sst [smem:[#allocation14_spill]] %s5607_s4 }
   0x6   :  { %5635 = sst [smem:[#allocation15_spill]] %s5608_s5 }
   0x7   :  { %5636 = sst [smem:[#allocation16_spill]] %s5609_s6 }
   0x8   :  { %5637 = sst [smem:[#allocation17_spill]] %s5610_s7 }
   0x9   :  { %5638 = sst [smem:[#allocation18_spill]] %s5611_s8 }
   0xa   :  { %5639 = sst [smem:[#allocation19_spill]] %s5612_s9 }
   0xb   :  { %5640 = sst [smem:[#allocation20_spill]] %s5613_s10 }
   0xc   :  { %5641 = sst [smem:[#allocation21_spill]] %s5617_s14 }
   0xd   :  { %5642 = sst [smem:[#allocation22_spill]] %s5618_s15 }
   0xe   :  { %5643 = sst [smem:[#allocation23_spill]] %s5619_s16 }
   0xf   :  { %5644 = sst [smem:[#allocation24_spill]] %s5623_s20 }
  0x10 LB: > { %5645 = sst [smem:[#allocation3_spill]] %s4890_s1  ;;  %s39_s25 = sadd.s32 1, %s4898_s23  ;;  %s4906_s2 = sphi %s5028_s2, %s30_s2   ;;  %s4902_s24 = sphi %s5026_s24, %s5678_s24   ;;  %s4898_s23 = sphi %s5024_s23, %s5677_s23   ;;  %s4894_s22 = sphi %s5022_s22, %s5676_s22   ;;  %s4890_s1 = sphi %s5020_s1, %s5675_s1  }
  0x11   : > { %5646 = sst [smem:[#allocation4_spill]] %s4898_s23  ;;  %s42_s3 = sadd.s32 1, %s4902_s24 }
  0x12   : > { %5647 = sst [smem:[#allocation5_spill]] %s4902_s24  ;;  %p40_p0 = scmp.ge.s32.totalorder %s39_s25, 2 }
  0x13   : > { %5648 = sst [smem:[#allocation6_spill]] %s4906_s2  ;;  %p3716_p1 = scmp.ge.s32.totalorder %s4906_s2, 1 }
  0x14   : > { %p679_p2 = scmp.lt.s32.totalorder %s4906_s2, 5  ;;  %s5680_s25 = smov (%p40_p0, %s39_s25), 0 }
  0x15   : > { %5649 = sst [smem:[#allocation7_spill]] %s5680_s25  ;;  %s5682_s3 = smov (!%p40_p0, %s42_s3), %s4902_s24 }
  0x16   : > { %p680_p3 = pnand %p3716_p1, %p679_p2  ;;  %p44_p4 = scmp.ge.s32.totalorder %s5682_s3, 2 }
  0x18   : > { %s5684_s3 = smov (%p44_p4, %s5682_s3), 0  ;;  %683 = sbr.rel (%p680_p3) target bundleno = 4060 (0xfdc), region = 100 }
  0x19   : > { %5650 = sst [smem:[#allocation8_spill]] %s5684_s3 }
  0x1d   : > { %p781_p5 = scmp.lt.s32.totalorder %s4894_s22, 1  ;;  %p785_p6 = scmp.lt.s32.totalorder %s4890_s1, 1 }
  0x1e   : > { %s5651_s30 = sld [smem:[#allocation10_spill]] }
  0x1f   : > { %s5686_s22 = smov (!%p781_p5, %s4894_s22), 1  ;;  %s5653_s8 = sld [smem:[#allocation18_spill]] }
  0x20   : > { %s5054_s26 = scalar_select %p785_p6, %s4890_s1, 1 }
  0x21   : > { %s3717_s27 = sshll.u32 %s5686_s22, 2  ;;  %s3726_s28 = sshll.u32 %s5686_s22, 3 }
  0x22   : > { %s4640_s21 = smul.u32 768, %s5054_s26  ;;  %s4113_s25 = sshll.u32 %s5054_s26, 6 }
  0x23   : > { %s4641_s3 = smul.u32 12, %s5054_s26  ;;  %s5654_s10 = sld [smem:[#allocation20_spill]] }
  0x24   : > { %s5059_s0 = scalar_lea.vmem %s5651_s30, %s3717_s27  ;;  %s5655_s9 = sld [smem:[#allocation19_spill]] }
  0x25   : > { %5652 = sst [smem:[#allocation9_spill]] %s5059_s0  ;;  %s5067_s2 = scalar_lea.vmem %s5653_s8, %s4640_s21 }
  0x26   : > { %s4114_s5 = sshll.u32 %s5054_s26, 7  ;;  %s3723_s7 = sshll.u32 %s5054_s26, 1 }
  0x27   : > { %s5656_s14 = sld [smem:[#allocation21_spill]]  ;;  %s824_s21 = scalar_lea.vmem %s5620_s17, %s5054_s26 }
  0x28   : > { %s5657_s15 = sld [smem:[#allocation22_spill]] }
  0x29   : > { %s5072_s22 = scalar_lea.vmem %s5654_s10, %s4113_s25  ;;  %s5658_s16 = sld [smem:[#allocation23_spill]] }
  0x2a   : > { %s5077_s27 = scalar_lea.vmem %s5655_s9, %s4641_s3  ;;  %s827_s10 = scalar_lea.vmem %s5621_s18, %s5054_s26 }
  0x2b   : > { %s5659_s4 = sld [smem:[#allocation24_spill]] }
  0x2c   : > { %s5660_s0 = sld [smem:[#allocation3_spill]] }
  0x2d   : > { %s5096_s6 = scalar_lea.vmem %s5656_s14, %s4114_s5  ;;  %s830_s14 = scalar_lea.vmem %s5622_s19, %s5054_s26 }
  0x2e   : > { %s5101_s29 = scalar_lea.vmem %s5657_s15, %s3723_s7 }
  0x2f   : > { %s5106_s20 = scalar_lea.vmem %s5658_s16, %s4114_s5 }
  0x31   : > { %s5123_s15 = scalar_lea.vmem %s5659_s4, %s3726_s28 }
  0x32   : > { %p3727_p7 = scmp.ne.s32.totalorder %s5660_s0, 0 }
  0x33   : > { %s5661_s1 = sld [smem:[#allocation12_spill]] (!%p3727_p7) }
  0x34   : > { %839 = sbr.rel (%p3727_p7) target bundleno = 273 (0x111), region = 104  ;;  %s5663_s24 = sld [smem:[#allocation9_spill]] (!%p3727_p7) }
  0x35   : > { %s5664_s0 = sld [smem:[#allocation13_spill]] (!%p3727_p7) }
  0x39   : > { %s5662_s16 = smov %s5661_s1  ;;  %v4689_v0 = vld [vmem:[%s5661_s1 + $0x18] sm:$0xff]   ;;  %v4908_v1 = vmov 0.0   ;;  %vm4909_vm0 = vmmov 0   ;;  %vm880_vm1 = vcmask 523264   ;;  %s5665_s1 = sld [smem:[#allocation11_spill]] }
  0x3a   : > { %4288 = vmatprep.subr.bf16.mxu0 %v4908_v1  ;;  %v4690_v2 = vld [vmem:[%s5662_s16 + $0x10] sm:$0xff]   ;;  %4296 = vmatprep.mubr.msk.bf16.mxu0 %vm4909_vm0, %v4908_v1  ;;  %v4691_v3 = vld [vmem:[%s5662_s16 + $0x8] sm:$0xff]   ;;  %v4692_v4 = vld [vmem:[%s5662_s16] sm:$0xff]  }
  0x3b   : > { %4289 = vmatpush3.bf16.msra.mxu0 %v4689_v0  ;;  %v840_v5 = vld [vmem:[%s5663_s24] sm:$0xf] }
  0x3c   : > { %4290 = vmatprep.subr.bf16.mxu0 %v4908_v1  ;;  %v3728_v6 = vld [vmem:[%s5664_s0] ss:$0 sm:$0xff] }
  0x3f   : > { %4291 = vmatpush3.bf16.msra.mxu0 %v4690_v2  ;;  %v924_v8 = vld [vmem:[%s5665_s1] sm:$0xff] }
  0x40   : > { %4292 = vmatprep.subr.bf16.mxu0 %v4908_v1 }
  0x43   : > { %4293 = vmatpush3.bf16.msra.mxu0 %v4691_v3 }
  0x44   : > { %4294 = vmatprep.subr.bf16.mxu0 %v4908_v1 }
  0x47   : > { %4295 = vmatpush3.bf16.msra.mxu0 %v4692_v4 }
  0x4a   : > { %4297 = vmatmul.mubr.msk.bf16.vlgmr.msra.gmra.mxu0 %vm880_vm1, %v840_v5 }
 0x10a   : > { %v918_v7 = vpop.f32.mrf.mxu0 }
 0x10b   : > { %v919_v9 = vadd.f32 %v3728_v6, %v918_v7 }
 0x10c   : > { %v4298_v10 = vpop.f32.mrf.mxu0 }
 0x10d   : > { %v925_v11 = vadd.f32 %v924_v8, %v919_v9 }
 0x10e   : > { %v921_v12 = vpop.f32.mrf.mxu0 }
 0x10f   : > { %926 = vst [vmem:[#allocation2] sm:$0xff] %v925_v11 }
 0x110   : > { %v4299_v13 = vpop.f32.mrf.mxu0 }
 0x111 PF: > { %v4693_v14 = vld [vmem:[%s5067_s2 + $0x138] sm:$0xff]   ;;  %v4910_v15 = vmov 0.0   ;;  %v4695_v17 = vld [vmem:[%s5067_s2 + $0x130] sm:$0xff]   ;;  %vm4911_vm2 = vmmov 0   ;;  %v4697_v19 = vld [vmem:[%s5067_s2 + $0x128] sm:$0xff]   ;;  %vm1269_vm3 = vcmask 261120   ;;  %s5667_s8 = scalar_lea.vmem %s5615_s12, %s5054_s26  ;;  %s5668_s28 = scalar_lea.vmem %s5616_s13, %s5054_s26 }
 0x112   : > { %4320 = vmatprep.subr.bf16.mxu1 %v4910_v15  ;;  %4300 = vmatprep.subr.bf16.mxu0 %v4910_v15  ;;  %v4694_v16 = vld [vmem:[%s5067_s2 + $0x38] sm:$0xff]   ;;  %v4696_v18 = vld [vmem:[%s5067_s2 + $0x30] sm:$0xff]   ;;  %v4698_v20 = vld [vmem:[%s5067_s2 + $0x28] sm:$0xff]   ;;  %vm2480_vm4 = vcmask 64512   ;;  %vm2537_vm5 = vcmask 1043456   ;;  %s5669_s4 = sld [smem:[#allocation3_spill]] }
 0x113   : > { %4321 = vmatpush3.bf16.msra.mxu1 %v4693_v14  ;;  %4336 = vmatprep.mubr.msk.bf16.mxu1 %vm4911_vm2, %v4910_v15  ;;  %v4699_v21 = vld [vmem:[%s5067_s2 + $0x120] sm:$0xff]   ;;  %v4701_v23 = vld [vmem:[%s5067_s2 + $0x118] sm:$0xff]   ;;  %v4703_v25 = vld [vmem:[%s5067_s2 + $0x110] sm:$0xff]  }
 0x114   : > { %4301 = vmatpush3.bf16.msra.mxu0 %v4694_v16  ;;  %4322 = vmatprep.subr.bf16.mxu1 %v4910_v15  ;;  %v4700_v22 = vld [vmem:[%s5067_s2 + $0x20] sm:$0xff]   ;;  %v4702_v24 = vld [vmem:[%s5067_s2 + $0x18] sm:$0xff]   ;;  %v4704_v26 = vld [vmem:[%s5067_s2 + $0x10] sm:$0xff]  }
 0x115   : > { %4302 = vmatprep.subr.bf16.mxu0 %v4910_v15  ;;  %4316 = vmatprep.mubr.msk.bf16.mxu0 %vm4911_vm2, %v4910_v15  ;;  %v4705_v27 = vld [vmem:[%s5067_s2 + $0x108] sm:$0xff]   ;;  %v4707_v29 = vld [vmem:[%s5067_s2 + $0x100] sm:$0xff]   ;;  %v4709_v33 = vld [vmem:[%s5067_s2 + $0x238] sm:$0xff]  }
 0x116   : > { %v4706_v28 = vld [vmem:[%s5067_s2 + $0x8] sm:$0xff]   ;;  %v4708_v30 = vld [vmem:[%s5067_s2] sm:$0xff]   ;;  %v4710_v34 = vld [vmem:[%s5067_s2 + $0x230] sm:$0xff]  }
 0x117   : > { %4323 = vmatpush3.bf16.msra.mxu1 %v4695_v17  ;;  %v927_v31 = vld [vmem:[#allocation2] sm:$0xff]  ;;  %v4711_v35 = vld [vmem:[%s5067_s2 + $0x228] sm:$0xff]   ;;  %v4713_v37 = vld [vmem:[%s5067_s2 + $0x218] sm:$0xff]  }
 0x118   : > { %4303 = vmatpush3.bf16.msra.mxu0 %v4696_v18  ;;  %4324 = vmatprep.subr.bf16.mxu1 %v4910_v15  ;;  %v5181_v32 = vpack.c.bf16 %v927_v31, %v927_v31  ;;  %v4712_v36 = vld [vmem:[%s5067_s2 + $0x220] sm:$0xff]   ;;  %v4714_v38 = vld [vmem:[%s5067_s2 + $0x210] sm:$0xff]   ;;  %v4715_v39 = vld [vmem:[%s5067_s2 + $0x208] sm:$0xff]   ;;  %p4099_p8 = scmp.ne.s32.totalorder %s5669_s4, 1 }
 0x119   : > { %4304 = vmatprep.subr.bf16.mxu0 %v4910_v15  ;;  %v4716_v40 = vld [vmem:[%s5067_s2 + $0x200] sm:$0xff]   ;;  %v4717_v41 = vld [vmem:[%s5067_s2 + $0x178] sm:$0xff]   ;;  %v4718_v42 = vld [vmem:[%s5067_s2 + $0x170] sm:$0xff]   ;;  %s5670_s30 = sld [smem:[#allocation16_spill]] (!%p4099_p8) }
 0x11a   : > { %v4719_v43 = vld [vmem:[%s5067_s2 + $0x168] sm:$0xff]   ;;  %v4720_v44 = vld [vmem:[%s5067_s2 + $0x160] sm:$0xff]   ;;  %v4722_v45 = vld [vmem:[%s5067_s2 + $0x158] sm:$0xff]   ;;  %s5672_s4 = sld [smem:[#allocation15_spill]] (!%p4099_p8) }
 0x11b   : > { %4325 = vmatpush3.bf16.msra.mxu1 %v4697_v19  ;;  %v4724_v46 = vld [vmem:[%s5067_s2 + $0x150] sm:$0xff]   ;;  %v4726_v47 = vld [vmem:[%s5067_s2 + $0x148] sm:$0xff]   ;;  %v4728_v48 = vld [vmem:[%s5067_s2 + $0x140] sm:$0xff]  }
 0x11c   : > { %4305 = vmatpush3.bf16.msra.mxu0 %v4698_v20  ;;  %4326 = vmatprep.subr.bf16.mxu1 %v4910_v15  ;;  %v3760_v49 = vld [vmem:[%s5077_s27 + $0x4] ss:$0 sm:$0xff]  ;;  %v3734_v54 = vld [vmem:[%s5077_s27] ss:$0 sm:$0xff]  ;;  %v4721_v0 = vld [vmem:[%s5067_s2 + $0x78] sm:$0xff]  }
 0x11d   : > { %4306 = vmatprep.subr.bf16.mxu0 %v4910_v15  ;;  %v4723_v1 = vld [vmem:[%s5067_s2 + $0x70] sm:$0xff]   ;;  %v4725_v2 = vld [vmem:[%s5067_s2 + $0x68] sm:$0xff]   ;;  %v4727_v3 = vld [vmem:[%s5067_s2 + $0x60] sm:$0xff]  }
 0x11e   : > { %v4729_v4 = vld [vmem:[%s5067_s2 + $0x58] sm:$0xff]   ;;  %v4730_v5 = vld [vmem:[%s5067_s2 + $0x50] sm:$0xff]   ;;  %v4731_v7 = vld [vmem:[%s5067_s2 + $0x48] sm:$0xff]  }
 0x11f   : > { %4327 = vmatpush3.bf16.msra.mxu1 %v4699_v21  ;;  %v4732_v10 = vld [vmem:[%s5067_s2 + $0x40] sm:$0xff]   ;;  %v4733_v12 = vld [vmem:[%s5067_s2 + $0x278] sm:$0xff]   ;;  %v4734_v13 = vld [vmem:[%s5067_s2 + $0x270] sm:$0xff]  }
 0x120   : > { %4307 = vmatpush3.bf16.msra.mxu0 %v4700_v22  ;;  %4328 = vmatprep.subr.bf16.mxu1 %v4910_v15  ;;  %v4735_v14 = vld [vmem:[%s5067_s2 + $0x268] sm:$0xff]   ;;  %v4736_v16 = vld [vmem:[%s5067_s2 + $0x260] sm:$0xff]   ;;  %v4737_v17 = vld [vmem:[%s5067_s2 + $0x258] sm:$0xff]  }
 0x121   : > { %4308 = vmatprep.subr.bf16.mxu0 %v4910_v15  ;;  %v4738_v18 = vld [vmem:[%s5067_s2 + $0x250] sm:$0xff]   ;;  %v4739_v19 = vld [vmem:[%s5067_s2 + $0x248] sm:$0xff]   ;;  %v4740_v20 = vld [vmem:[%s5067_s2 + $0x240] sm:$0xff]  }
 0x122   : > { %v3839_v21 = vld [vmem:[%s5077_s27 + $0x5] ss:$0 sm:$0xff]  ;;  %v4743_v31 = vld [vmem:[%s5067_s2 + $0x1a8] sm:$0xff]  }
 0x123   : > { %4329 = vmatpush3.bf16.msra.mxu1 %v4701_v23 }
 0x124   : > { %4309 = vmatpush3.bf16.msra.mxu0 %v4702_v24  ;;  %4330 = vmatprep.subr.bf16.mxu1 %v4910_v15  ;;  %v4741_v24 = vld [vmem:[%s5067_s2 + $0x1b8] sm:$0xff]  }
 0x125   : > { %4310 = vmatprep.subr.bf16.mxu0 %v4910_v15 }
 0x127   : > { %4331 = vmatpush3.bf16.msra.mxu1 %v4703_v25 }
 0x128   : > { %4311 = vmatpush3.bf16.msra.mxu0 %v4704_v26  ;;  %4332 = vmatprep.subr.bf16.mxu1 %v4910_v15 }
 0x129   : > { %4312 = vmatprep.subr.bf16.mxu0 %v4910_v15 }
 0x12b   : > { %4333 = vmatpush3.bf16.msra.mxu1 %v4705_v27 }
 0x12c   : > { %4313 = vmatpush3.bf16.msra.mxu0 %v4706_v28  ;;  %4334 = vmatprep.subr.bf16.mxu1 %v4910_v15 }
 0x12d   : > { %4314 = vmatprep.subr.bf16.mxu0 %v4910_v15 }
 0x12f   : > { %4335 = vmatpush3.bf16.msra.mxu1 %v4707_v29  ;;  %v4742_v29 = vld [vmem:[%s5067_s2 + $0x1b0] sm:$0xff]  }
 0x130   : > { %4315 = vmatpush3.bf16.msra.mxu0 %v4708_v30  ;;  %4360 = vmatprep.subr.bf16.mxu1 %v4910_v15 }
 0x131   : > { %4340 = vmatprep.subr.bf16.mxu0 %v4910_v15 }
 0x132   : > { %4337 = vmatmul.mubr.bf16.vlgmr.msra.gmra.mxu1 %v5181_v32 }
 0x133   : > { %4317 = vmatmul.mubr.bf16.vlgmr.msra.gmra.mxu0 %v5181_v32  ;;  %4362 = vmatprep.mubr.msk.bf16.mxu1 %vm4911_vm2, %v4910_v15 }
 0x134   : > { %4341 = vmatpush3.bf16.msra.mxu0 %v4709_v33  ;;  %4356 = vmatprep.mubr.msk.bf16.mxu0 %vm4911_vm2, %v4910_v15  ;;  %v4744_v33 = vld [vmem:[%s5067_s2 + $0x1a0] sm:$0xff]  }
 0x135   : > { %4342 = vmatprep.subr.bf16.mxu0 %v4910_v15 }
 0x138   : > { %4343 = vmatpush3.bf16.msra.mxu0 %v4710_v34  ;;  %v4746_v34 = vld [vmem:[%s5067_s2 + $0x198] sm:$0xff]  }
 0x139   : > { %4344 = vmatprep.subr.bf16.mxu0 %v4910_v15 }
 0x13c   : > { %4345 = vmatpush3.bf16.msra.mxu0 %v4711_v35  ;;  %v4748_v35 = vld [vmem:[%s5067_s2 + $0x190] sm:$0xff]  }
 0x13d   : > { %4346 = vmatprep.subr.bf16.mxu0 %v4910_v15 }
 0x140   : > { %4347 = vmatpush3.bf16.msra.mxu0 %v4712_v36  ;;  %v4750_v36 = vld [vmem:[%s5067_s2 + $0x188] sm:$0xff]  }
 0x141   : > { %4348 = vmatprep.subr.bf16.mxu0 %v4910_v15 }
 0x144   : > { %4349 = vmatpush3.bf16.msra.mxu0 %v4713_v37  ;;  %v4752_v37 = vld [vmem:[%s5067_s2 + $0x180] sm:$0xff]  }
 0x145   : > { %4350 = vmatprep.subr.bf16.mxu0 %v4910_v15 }
 0x148   : > { %4351 = vmatpush3.bf16.msra.mxu0 %v4714_v38 }
 0x149   : > { %4352 = vmatprep.subr.bf16.mxu0 %v4910_v15 }
 0x14c   : > { %4353 = vmatpush3.bf16.msra.mxu0 %v4715_v39 }
 0x14d   : > { %4354 = vmatprep.subr.bf16.mxu0 %v4910_v15 }
 0x150   : > { %4355 = vmatpush3.bf16.msra.mxu0 %v4716_v40 }
 0x151   : > { %4386 = vmatprep.subr.bf16.mxu0 %v4910_v15 }
 0x153   : > { %4357 = vmatmul.mubr.bf16.vlgmr.msra.gmra.mxu0 %v5181_v32 }
 0x154   : > { %4387 = vmatpush3.bf16.msra.mxu0 %v4717_v41  ;;  %4402 = vmatprep.mubr.msk.bf16.mxu0 %vm4911_vm2, %v4910_v15 }
 0x155   : > { %4388 = vmatprep.subr.bf16.mxu0 %v4910_v15 }
 0x158   : > { %4389 = vmatpush3.bf16.msra.mxu0 %v4718_v42 }
 0x159   : > { %4390 = vmatprep.subr.bf16.mxu0 %v4910_v15 }
 0x15c   : > { %4391 = vmatpush3.bf16.msra.mxu0 %v4719_v43  ;;  %v3813_v43 = vld [vmem:[%s5077_s27 + $0x1] ss:$0 sm:$0xff] }
 0x15d   : > { %4392 = vmatprep.subr.bf16.mxu0 %v4910_v15 }
 0x160   : > { %4393 = vmatpush3.bf16.msra.mxu0 %v4720_v44 }
 0x161   : > { %4394 = vmatprep.subr.bf16.mxu0 %v4910_v15 }
 0x164   : > { %4395 = vmatpush3.bf16.msra.mxu0 %v4722_v45 }
 0x165   : > { %4396 = vmatprep.subr.bf16.mxu0 %v4910_v15 }
 0x168   : > { %4397 = vmatpush3.bf16.msra.mxu0 %v4724_v46 }
 0x169   : > { %4398 = vmatprep.subr.bf16.mxu0 %v4910_v15 }
 0x16c   : > { %4399 = vmatpush3.bf16.msra.mxu0 %v4726_v47  ;;  %v4745_v47 = vld [vmem:[%s5067_s2 + $0xb8] sm:$0xff]  }
 0x16d   : > { %4400 = vmatprep.subr.bf16.mxu0 %v4910_v15 }
 0x170   : > { %4401 = vmatpush3.bf16.msra.mxu0 %v4728_v48 }
 0x171   : > { %4426 = vmatprep.subr.bf16.mxu0 %v4910_v15 }
 0x173   : > { %4403 = vmatmul.mubr.bf16.vlgmr.msra.gmra.mxu0 %v5181_v32 }
 0x174   : > { %4428 = vmatprep.mubr.msk.bf16.mxu0 %vm4911_vm2, %v4910_v15 }
 0x1f2   : > { %v1147_v50 = vpop.f32.mrf.mxu1 }
 0x1f3   : > { %v1148_v51 = vadd.f32 %v3760_v49, %v1147_v50  ;;  %v1034_v52 = vpop.f32.mrf.mxu0 }
 0x1f4   : > { %v4338_v53 = vpop.f32.mrf.mxu1  ;;  %v1035_v59 = vadd.f32 %v3734_v54, %v1034_v52  ;;  %v4749_v52 = vld [vmem:[%s5067_s2 + $0xa8] sm:$0xff]   ;;  %v4753_v54 = vld [vmem:[%s5067_s2 + $0x98] sm:$0xff]  }
 0x1f5   : > { %v1268_v55 = vpack.c.bf16 %v1148_v51, %v1148_v51  ;;  %v4318_v56 = vpop.f32.mrf.mxu0  ;;  %v4747_v51 = vld [vmem:[%s5067_s2 + $0xb0] sm:$0xff]   ;;  %v4751_v53 = vld [vmem:[%s5067_s2 + $0xa0] sm:$0xff]  }
 0x1f6   : > { %v1150_v57 = vpop.f32.mrf.mxu1  ;;  %v1267_v63 = vpack.c.bf16 %v1035_v59, %v1035_v59  ;;  %v4755_v56 = vld [vmem:[%s5067_s2 + $0x88] sm:$0xff]   ;;  %v4758_v59 = vld [vmem:[%s5067_s2 + $0x2b0] sm:$0xff]  }
 0x1f7   : > { %v1274_v58 = vsel %vm1269_vm3, %v1268_v55, 0  ;;  %v1037_v60 = vpop.f32.mrf.mxu0  ;;  %v4754_v55 = vld [vmem:[%s5067_s2 + $0x90] sm:$0xff]   ;;  %v4756_v57 = vld [vmem:[%s5067_s2 + $0x80] sm:$0xff]  }
 0x1f8   : > { %v4339_v61 = vpop.f32.mrf.mxu1  ;;  %4361 = vmatpush3.bf16.xpose.msra.mxu1 %v1274_v58  ;;  %v4757_v58 = vld [vmem:[%s5067_s2 + $0x2b8] sm:$0xff]   ;;  %v4759_v60 = vld [vmem:[%s5067_s2 + $0x2a8] sm:$0xff]  }
 0x1f9   : > { %v4319_v62 = vpop.f32.mrf.mxu0  ;;  %4366 = vmatprep.subr.bf16.mxu1 %v4910_v15 }
 0x1ff   : > { %4363 = vmatmul.mubr.msk.bf16.vlgmr.msra.gmra.mxu1 %vm1269_vm3, %v1267_v63 }
 0x200   : > { %4367 = vmatpush3.bf16.msra.mxu1 %v4721_v0  ;;  %4382 = vmatprep.mubr.msk.bf16.mxu1 %vm4911_vm2, %v4910_v15 }
 0x201   : > { %4368 = vmatprep.subr.bf16.mxu1 %v4910_v15 }
 0x204   : > { %4369 = vmatpush3.bf16.msra.mxu1 %v4723_v1  ;;  %v4760_v1 = vld [vmem:[%s5067_s2 + $0x2a0] sm:$0xff]  }
 0x205   : > { %4370 = vmatprep.subr.bf16.mxu1 %v4910_v15 }
 0x208   : > { %4371 = vmatpush3.bf16.msra.mxu1 %v4725_v2  ;;  %v4761_v2 = vld [vmem:[%s5067_s2 + $0x298] sm:$0xff]  }
 0x209   : > { %4372 = vmatprep.subr.bf16.mxu1 %v4910_v15 }
 0x20c   : > { %4373 = vmatpush3.bf16.msra.mxu1 %v4727_v3  ;;  %v4762_v3 = vld [vmem:[%s5067_s2 + $0x290] sm:$0xff]  }
 0x20d   : > { %4374 = vmatprep.subr.bf16.mxu1 %v4910_v15 }
 0x210   : > { %4375 = vmatpush3.bf16.msra.mxu1 %v4729_v4  ;;  %v4763_v4 = vld [vmem:[%s5067_s2 + $0x288] sm:$0xff]  }
 0x211   : > { %4376 = vmatprep.subr.bf16.mxu1 %v4910_v15 }
 0x213   : > { %v5247_v6 = vpop.f32.mrf.mxu0 }
 0x214   : > { %4377 = vmatpush3.bf16.msra.mxu1 %v4730_v5  ;;  %v4764_v5 = vld [vmem:[%s5067_s2 + $0x280] sm:$0xff]  }
 0x215   : > { %4378 = vmatprep.subr.bf16.mxu1 %v4910_v15  ;;  %v4358_v8 = vpop.f32.mrf.mxu0 }
 0x217   : > { %v1263_v9 = vpop.f32.mrf.mxu0 }
 0x218   : > { %4379 = vmatpush3.bf16.msra.mxu1 %v4731_v7  ;;  %v3918_v7 = vld [vmem:[%s5077_s27 + $0x6] ss:$0 sm:$0xff] }
 0x219   : > { %4380 = vmatprep.subr.bf16.mxu1 %v4910_v15  ;;  %v4359_v11 = vpop.f32.mrf.mxu0 }
 0x21c   : > { %4381 = vmatpush3.bf16.msra.mxu1 %v4732_v10  ;;  %v4765_v10 = vld [vmem:[%s5067_s2 + $0x1f8] sm:$0xff]  }
 0x21d   : > { %4406 = vmatprep.subr.bf16.mxu1 %v4910_v15 }
 0x21f   : > { %4383 = vmatmul.mubr.bf16.vlgmr.msra.gmra.mxu1 %v5181_v32 }
 0x220   : > { %4407 = vmatpush3.bf16.msra.mxu1 %v4733_v12  ;;  %4422 = vmatprep.mubr.msk.bf16.mxu1 %vm4911_vm2, %v4910_v15 }
 0x221   : > { %4408 = vmatprep.subr.bf16.mxu1 %v4910_v15 }
 0x224   : > { %4409 = vmatpush3.bf16.msra.mxu1 %v4734_v13 }
 0x225   : > { %4410 = vmatprep.subr.bf16.mxu1 %v4910_v15 }
 0x228   : > { %4411 = vmatpush3.bf16.msra.mxu1 %v4735_v14 }
 0x229   : > { %4412 = vmatprep.subr.bf16.mxu1 %v4910_v15 }
 0x22c   : > { %4413 = vmatpush3.bf16.msra.mxu1 %v4736_v16  ;;  %v4766_v16 = vld [vmem:[%s5067_s2 + $0x1f0] sm:$0xff]  }
 0x22d   : > { %4414 = vmatprep.subr.bf16.mxu1 %v4910_v15 }
 0x230   : > { %4415 = vmatpush3.bf16.msra.mxu1 %v4737_v17 }
 0x231   : > { %4416 = vmatprep.subr.bf16.mxu1 %v4910_v15 }
 0x233   : > { %v1536_v22 = vpop.f32.mrf.mxu0 }
 0x234   : > { %4417 = vmatpush3.bf16.msra.mxu1 %v4738_v18  ;;  %v1537_v23 = vadd.f32 %v3839_v21, %v1536_v22  ;;  %v4767_v18 = vld [vmem:[%s5067_s2 + $0x1e8] sm:$0xff]   ;;  %v4772_v21 = vld [vmem:[%s5067_s2 + $0x1d0] sm:$0xff]  }
 0x235   : > { %4418 = vmatprep.subr.bf16.mxu1 %v4910_v15  ;;  %v4404_v25 = vpop.f32.mrf.mxu0  ;;  %v4774_v22 = vld [vmem:[%s5067_s2 + $0x1c8] sm:$0xff]  }
 0x236   : > { %v1657_v26 = vpack.c.bf16 %v1537_v23, %v1537_v23  ;;  %v4776_v23 = vld [vmem:[%s5067_s2 + $0x1c0] sm:$0xff]  }
 0x237   : > { %v1539_v27 = vpop.f32.mrf.mxu0 }
 0x238   : > { %4419 = vmatpush3.bf16.msra.mxu1 %v4739_v19  ;;  %v1662_v28 = vsel %vm1269_vm3, %v1657_v26, 0  ;;  %v4768_v19 = vld [vmem:[%s5067_s2 + $0x1e0] sm:$0xff]  }
 0x239   : > { %4420 = vmatprep.subr.bf16.mxu1 %v4910_v15  ;;  %v4405_v30 = vpop.f32.mrf.mxu0  ;;  %4427 = vmatpush3.bf16.xpose.msra.mxu0 %v1662_v28 }
 0x23a   : > { %4432 = vmatprep.subr.bf16.mxu0 %v4910_v15 }
 0x23c   : > { %4421 = vmatpush3.bf16.msra.mxu1 %v4740_v20  ;;  %v4770_v20 = vld [vmem:[%s5067_s2 + $0x1d8] sm:$0xff]  }
 0x23d   : > { %4452 = vmatprep.subr.bf16.mxu1 %v4910_v15 }
 0x23f   : > { %4423 = vmatmul.mubr.bf16.vlgmr.msra.gmra.mxu1 %v5181_v32 }
 0x240   : > { %4453 = vmatpush3.bf16.msra.mxu1 %v4741_v24  ;;  %4468 = vmatprep.mubr.msk.bf16.mxu1 %vm4911_vm2, %v4910_v15 }
 0x241   : > { %4454 = vmatprep.subr.bf16.mxu1 %v4910_v15 }
 0x244   : > { %4455 = vmatpush3.bf16.msra.mxu1 %v4742_v29 }
 0x245   : > { %4456 = vmatprep.subr.bf16.mxu1 %v4910_v15 }
 0x248   : > { %4457 = vmatpush3.bf16.msra.mxu1 %v4743_v31 }
 0x249   : > { %4458 = vmatprep.subr.bf16.mxu1 %v4910_v15 }
 0x24c   : > { %4459 = vmatpush3.bf16.msra.mxu1 %v4744_v33 }
 0x24d   : > { %4460 = vmatprep.subr.bf16.mxu1 %v4910_v15 }
 0x250   : > { %4461 = vmatpush3.bf16.msra.mxu1 %v4746_v34 }
 0x251   : > { %4462 = vmatprep.subr.bf16.mxu1 %v4910_v15 }
 0x254   : > { %4463 = vmatpush3.bf16.msra.mxu1 %v4748_v35  ;;  %v3892_v35 = vld [vmem:[%s5077_s27 + $0x2] ss:$0 sm:$0xff] }
 0x255   : > { %4464 = vmatprep.subr.bf16.mxu1 %v4910_v15 }
 0x258   : > { %4465 = vmatpush3.bf16.msra.mxu1 %v4750_v36 }
 0x259   : > { %4466 = vmatprep.subr.bf16.mxu1 %v4910_v15 }
 0x25c   : > { %4467 = vmatpush3.bf16.msra.mxu1 %v4752_v37 }
 0x25d   : > { %4492 = vmatprep.subr.bf16.mxu1 %v4910_v15 }
 0x25f   : > { %4469 = vmatmul.mubr.bf16.vlgmr.msra.gmra.mxu1 %v5181_v32 }
 0x260   : > { %4494 = vmatprep.mubr.msk.bf16.mxu1 %vm4911_vm2, %v4910_v15 }
 0x2bf   : > { %v5298_v38 = vpop.f32.mrf.mxu1 }
 0x2c0   : > { %v2481_v39 = vsel %vm2480_vm4, %v5298_v38, -inf }
 0x2c1   : > { %2482 = vmax.xlane.f32.xlu0 %v2481_v39  ;;  %v4364_v40 = vpop.f32.mrf.mxu1  ;;  %v4769_v39 = vld [vmem:[%s5067_s2 + $0xf8] sm:$0xff]  }
 0x2c3   : > { %v1313_v41 = vpop.f32.mrf.mxu1 }
 0x2c5   : > { %v4365_v42 = vpop.f32.mrf.mxu1 }
 0x2df   : > { %v1423_v44 = vpop.f32.mrf.mxu1 }
 0x2e0   : > { %v1424_v45 = vadd.f32 %v3813_v43, %v1423_v44  ;;  %v4771_v43 = vld [vmem:[%s5067_s2 + $0xf0] sm:$0xff]   ;;  %v4773_v44 = vld [vmem:[%s5067_s2 + $0xe8] sm:$0xff]  }
 0x2e1   : > { %v4384_v46 = vpop.f32.mrf.mxu1 }
 0x2e2   : > { %v1656_v48 = vpack.c.bf16 %v1424_v45, %v1424_v45  ;;  %v4775_v45 = vld [vmem:[%s5067_s2 + $0xe0] sm:$0xff]   ;;  %v4777_v46 = vld [vmem:[%s5067_s2 + $0xd8] sm:$0xff]  }
 0x2e3   : > { %v1426_v49 = vpop.f32.mrf.mxu1 }
 0x2e4   : > { %4429 = vmatmul.mubr.msk.bf16.vlgmr.msra.gmra.mxu0 %vm1269_vm3, %v1656_v48  ;;  %v4779_v48 = vld [vmem:[%s5067_s2 + $0xc8] sm:$0xff]   ;;  %v4780_v49 = vld [vmem:[%s5067_s2 + $0xc0] sm:$0xff]  }
 0x2e5   : > { %4433 = vmatpush3.bf16.msra.mxu0 %v4745_v47  ;;  %v4385_v50 = vpop.f32.mrf.mxu1  ;;  %4448 = vmatprep.mubr.msk.bf16.mxu0 %vm4911_vm2, %v4910_v15  ;;  %v4778_v47 = vld [vmem:[%s5067_s2 + $0xd0] sm:$0xff]  }
 0x2e6   : > { %4434 = vmatprep.subr.bf16.mxu0 %v4910_v15 }
 0x2e9   : > { %4435 = vmatpush3.bf16.msra.mxu0 %v4747_v51 }
 0x2ea   : > { %4436 = vmatprep.subr.bf16.mxu0 %v4910_v15 }
 0x2ed   : > { %4437 = vmatpush3.bf16.msra.mxu0 %v4749_v52 }
 0x2ee   : > { %4438 = vmatprep.subr.bf16.mxu0 %v4910_v15 }
 0x2f1   : > { %4439 = vmatpush3.bf16.msra.mxu0 %v4751_v53 }
 0x2f2   : > { %4440 = vmatprep.subr.bf16.mxu0 %v4910_v15 }
 0x2f5   : > { %4441 = vmatpush3.bf16.msra.mxu0 %v4753_v54  ;;  %v3997_v54 = vld [vmem:[%s5077_s27 + $0x7] ss:$0 sm:$0xff] }
 0x2f6   : > { %4442 = vmatprep.subr.bf16.mxu0 %v4910_v15 }
 0x2f9   : > { %4443 = vmatpush3.bf16.msra.mxu0 %v4754_v55 }
 0x2fa   : > { %4444 = vmatprep.subr.bf16.mxu0 %v4910_v15 }
 0x2fd   : > { %4445 = vmatpush3.bf16.msra.mxu0 %v4755_v56 }
 0x2fe   : > { %4446 = vmatprep.subr.bf16.mxu0 %v4910_v15 }
 0x2ff   : > { %v5331_v61 = vpop.f32.mrf.mxu1 }
 0x301   : > { %4447 = vmatpush3.bf16.msra.mxu0 %v4756_v57  ;;  %v4424_v62 = vpop.f32.mrf.mxu1 }
 0x302   : > { %4472 = vmatprep.subr.bf16.mxu0 %v4910_v15 }
 0x303   : > { %v1652_v63 = vpop.f32.mrf.mxu1 }
 0x304   : > { %4449 = vmatmul.mubr.bf16.vlgmr.msra.gmra.mxu0 %v5181_v32 }
 0x305   : > { %4473 = vmatpush3.bf16.msra.mxu0 %v4757_v58  ;;  %4488 = vmatprep.mubr.msk.bf16.mxu0 %vm4911_vm2, %v4910_v15  ;;  %v4425_v0 = vpop.f32.mrf.mxu1 }
 0x306   : > { %4474 = vmatprep.subr.bf16.mxu0 %v4910_v15 }
 0x309   : > { %4475 = vmatpush3.bf16.msra.mxu0 %v4758_v59 }
 0x30a   : > { %4476 = vmatprep.subr.bf16.mxu0 %v4910_v15 }
 0x30d   : > { %4477 = vmatpush3.bf16.msra.mxu0 %v4759_v60 }
 0x30e   : > { %4478 = vmatprep.subr.bf16.mxu0 %v4910_v15 }
 0x311   : > { %4479 = vmatpush3.bf16.msra.mxu0 %v4760_v1 }
 0x312   : > { %4480 = vmatprep.subr.bf16.mxu0 %v4910_v15 }
 0x315   : > { %4481 = vmatpush3.bf16.msra.mxu0 %v4761_v2 }
 0x316   : > { %4482 = vmatprep.subr.bf16.mxu0 %v4910_v15 }
 0x319   : > { %4483 = vmatpush3.bf16.msra.mxu0 %v4762_v3 }
 0x31a   : > { %4484 = vmatprep.subr.bf16.mxu0 %v4910_v15 }
 0x31d   : > { %4485 = vmatpush3.bf16.msra.mxu0 %v4763_v4  ;;  %v3786_v4 = vld [vmem:[%s5077_s27 + $0x8] ss:$0 sm:$0xff] }
 0x31e   : > { %4486 = vmatprep.subr.bf16.mxu0 %v4910_v15 }
 0x31f   : > { %v1924_v8 = vpop.f32.mrf.mxu1 }
 0x320   : > { %v1925_v9 = vadd.f32 %v3918_v7, %v1924_v8  ;;  %v3971_v7 = vld [vmem:[%s5077_s27 + $0x3] ss:$0 sm:$0xff] }
 0x321   : > { %4487 = vmatpush3.bf16.msra.mxu0 %v4764_v5  ;;  %v4470_v11 = vpop.f32.mrf.mxu1  ;;  %v1261_v5 = vadd.f32 %v3786_v4, %v5247_v6  ;;  %v4023_v4 = vld [vmem:[%s5077_s27 + $0xb] ss:$0 sm:$0xff] }
 0x322   : > { %4518 = vmatprep.subr.bf16.mxu0 %v4910_v15  ;;  %v2045_v12 = vpack.c.bf16 %v1925_v9, %v1925_v9 }
 0x323   : > { %v1927_v13 = vpop.f32.mrf.mxu1  ;;  %v1266_v9 = vpack.c.bf16 %v1261_v5, %v1261_v5 }
 0x324   : > { %4489 = vmatmul.mubr.bf16.vlgmr.msra.gmra.mxu0 %v5181_v32  ;;  %v2050_v14 = vsel %vm1269_vm3, %v2045_v12, 0 }
 0x325   : > { %4519 = vmatpush3.bf16.msra.mxu0 %v4765_v10  ;;  %4534 = vmatprep.mubr.msk.bf16.mxu0 %vm4911_vm2, %v4910_v15  ;;  %v4471_v17 = vpop.f32.mrf.mxu1 }
 0x326   : > { %4520 = vmatprep.subr.bf16.mxu0 %v4910_v15  ;;  %4493 = vmatpush3.bf16.xpose.msra.mxu1 %v2050_v14  ;;  %v2539_v14 = vsel %vm2537_vm5, %v1266_v9, 0 }
 0x327   : > { %4498 = vmatprep.subr.bf16.mxu1 %v4910_v15 }
 0x329   : > { %4521 = vmatpush3.bf16.msra.mxu0 %v4766_v16 }
 0x32a   : > { %4522 = vmatprep.subr.bf16.mxu0 %v4910_v15 }
 0x32d   : > { %4523 = vmatpush3.bf16.msra.mxu0 %v4767_v18 }
 0x32e   : > { %4524 = vmatprep.subr.bf16.mxu0 %v4910_v15 }
 0x331   : > { %4525 = vmatpush3.bf16.msra.mxu0 %v4768_v19 }
 0x332   : > { %4526 = vmatprep.subr.bf16.mxu0 %v4910_v15 }
 0x335   : > { %4527 = vmatpush3.bf16.msra.mxu0 %v4770_v20 }
 0x336   : > { %4528 = vmatprep.subr.bf16.mxu0 %v4910_v15 }
 0x339   : > { %4529 = vmatpush3.bf16.msra.mxu0 %v4772_v21  ;;  %v4781_v21 = vld [vmem:[%s5067_s2 + $0x2f8] sm:$0xff]  }
 0x33a   : > { %4530 = vmatprep.subr.bf16.mxu0 %v4910_v15 }
 0x33d   : > { %4531 = vmatpush3.bf16.msra.mxu0 %v4774_v22  ;;  %v4782_v22 = vld [vmem:[%s5067_s2 + $0x2f0] sm:$0xff]  }
 0x33e   : > { %4532 = vmatprep.subr.bf16.mxu0 %v4910_v15 }
 0x341   : > { %4533 = vmatpush3.bf16.msra.mxu0 %v4776_v23  ;;  %v4783_v23 = vld [vmem:[%s5067_s2 + $0x2e8] sm:$0xff]  }
 0x342   : > { %4558 = vmatprep.subr.bf16.mxu0 %v4910_v15 }
 0x344   : > { %4535 = vmatmul.mubr.bf16.vlgmr.msra.gmra.mxu0 %v5181_v32 }
 0x345   : > { %4560 = vmatprep.mubr.msk.bf16.mxu0 %vm4911_vm2, %v4910_v15 }
 0x34a   : > { %v2483_v24 = vpop.xlane.xlu0 %2482 }
 0x34b   : > { %v2493_v25 = vsub.f32 %v5298_v38, %v2483_v24  ;;  %v4784_v24 = vld [vmem:[%s5067_s2 + $0x2e0] sm:$0xff]  }
 0x34d   : > { %v2497_v26 = vmul.f32 1.442695, %v2493_v25  ;;  %v4785_v25 = vld [vmem:[%s5067_s2 + $0x2d8] sm:$0xff]  }
 0x34f   : > { %4837 = vpow2.f32 %v2497_v26  ;;  %v4786_v26 = vld [vmem:[%s5067_s2 + $0x2d0] sm:$0xff]  }
 0x35c   : > { %v5373_v29 = vpop.eup %4837 }
 0x35d   : > { %v2505_v33 = vsel %vm2480_vm4, %v5373_v29, 0.0 }
 0x3a4   : > { %v5369_v27 = vpop.f32.mrf.mxu0 }
 0x3a5   : > { %v2484_v28 = vsel %vm2480_vm4, %v5369_v27, -inf }
 0x3a6   : > { %2485 = vmax.xlane.f32.xlu0 %v2484_v28  ;;  %v4430_v30 = vpop.f32.mrf.mxu0  ;;  %v4787_v28 = vld [vmem:[%s5067_s2 + $0x2c8] sm:$0xff]  }
 0x3a7   : > { %v4788_v30 = vld [vmem:[%s5067_s2 + $0x2c0] sm:$0xff]  }
 0x3a8   : > { %v1701_v31 = vpop.f32.mrf.mxu0 }
 0x3aa   : > { %2506 = vadd.xlane.f32.xlu0 %v2505_v33  ;;  %v4431_v34 = vpop.f32.mrf.mxu0 }
 0x3c4   : > { %v1811_v36 = vpop.f32.mrf.mxu0 }
 0x3c5   : > { %v1812_v37 = vadd.f32 %v3892_v35, %v1811_v36 }
 0x3c6   : > { %v4450_v38 = vpop.f32.mrf.mxu0 }
 0x3c7   : > { %v2044_v40 = vpack.c.bf16 %v1812_v37, %v1812_v37 }
 0x3c8   : > { %v1814_v41 = vpop.f32.mrf.mxu0 }
 0x3c9   : > { %4495 = vmatmul.mubr.msk.bf16.vlgmr.msra.gmra.mxu1 %vm1269_vm3, %v2044_v40 }
 0x3ca   : > { %4499 = vmatpush3.bf16.msra.mxu1 %v4769_v39  ;;  %v4451_v42 = vpop.f32.mrf.mxu0  ;;  %4514 = vmatprep.mubr.msk.bf16.mxu1 %vm4911_vm2, %v4910_v15 }
 0x3cb   : > { %4500 = vmatprep.subr.bf16.mxu1 %v4910_v15 }
 0x3ce   : > { %4501 = vmatpush3.bf16.msra.mxu1 %v4771_v43 }
 0x3cf   : > { %4502 = vmatprep.subr.bf16.mxu1 %v4910_v15 }
 0x3d2   : > { %4503 = vmatpush3.bf16.msra.mxu1 %v4773_v44 }
 0x3d3   : > { %4504 = vmatprep.subr.bf16.mxu1 %v4910_v15 }
 0x3d6   : > { %4505 = vmatpush3.bf16.msra.mxu1 %v4775_v45  ;;  %v3865_v45 = vld [vmem:[%s5077_s27 + $0x9] ss:$0 sm:$0xff] }
 0x3d7   : > { %4506 = vmatprep.subr.bf16.mxu1 %v4910_v15 }
 0x3da   : > { %4507 = vmatpush3.bf16.msra.mxu1 %v4777_v46  ;;  %v1650_v46 = vadd.f32 %v3865_v45, %v5331_v61 }
 0x3db   : > { %4508 = vmatprep.subr.bf16.mxu1 %v4910_v15 }
 0x3de   : > { %4509 = vmatpush3.bf16.msra.mxu1 %v4778_v47 }
 0x3df   : > { %4510 = vmatprep.subr.bf16.mxu1 %v4910_v15 }
 0x3e2   : > { %4511 = vmatpush3.bf16.msra.mxu1 %v4779_v48 }
 0x3e3   : > { %4512 = vmatprep.subr.bf16.mxu1 %v4910_v15 }
 0x3e4   : > { %v5400_v50 = vpop.f32.mrf.mxu0 }
 0x3e6   : > { %4513 = vmatpush3.bf16.msra.mxu1 %v4780_v49  ;;  %v4490_v51 = vpop.f32.mrf.mxu0 }
 0x3e7   : > { %4538 = vmatprep.subr.bf16.mxu1 %v4910_v15 }
 0x3e8   : > { %v2040_v52 = vpop.f32.mrf.mxu0 }
 0x3e9   : > { %4515 = vmatmul.mubr.bf16.vlgmr.msra.gmra.mxu1 %v5181_v32  ;;  %v1655_v52 = vpack.c.bf16 %v1650_v46, %v1650_v46 }
 0x3ea   : > { %4554 = vmatprep.mubr.msk.bf16.mxu1 %vm4911_vm2, %v4910_v15  ;;  %v4491_v53 = vpop.f32.mrf.mxu0  ;;  %4539 = vmatpush3.bf16.msra.mxu1 %v4781_v21 }
 0x3eb   : > { %4540 = vmatprep.subr.bf16.mxu1 %v4910_v15 }
 0x3ee   : > { %4541 = vmatpush3.bf16.msra.mxu1 %v4782_v22 }
 0x3ef   : > { %4542 = vmatprep.subr.bf16.mxu1 %v4910_v15 }
 0x3f2   : > { %4543 = vmatpush3.bf16.msra.mxu1 %v4783_v23  ;;  %v4793_v23 = vld [vmem:[%s5072_s22 + $0x28] sm:$0xff]  }
 0x3f3   : > { %4544 = vmatprep.subr.bf16.mxu1 %v4910_v15 }
 0x3f6   : > { %4545 = vmatpush3.bf16.msra.mxu1 %v4784_v24 }
 0x3f7   : > { %4546 = vmatprep.subr.bf16.mxu1 %v4910_v15 }
 0x3fa   : > { %4547 = vmatpush3.bf16.msra.mxu1 %v4785_v25 }
 0x3fb   : > { %4548 = vmatprep.subr.bf16.mxu1 %v4910_v15 }
 0x3fe   : > { %4549 = vmatpush3.bf16.msra.mxu1 %v4786_v26 }
 0x3ff   : > { %4550 = vmatprep.subr.bf16.mxu1 %v4910_v15 }
 0x402   : > { %4551 = vmatpush3.bf16.msra.mxu1 %v4787_v28  ;;  %v4794_v28 = vld [vmem:[%s5072_s22 + $0x20] sm:$0xff]  }
 0x403   : > { %4552 = vmatprep.subr.bf16.mxu1 %v4910_v15 }
 0x404   : > { %v2312_v55 = vpop.f32.mrf.mxu0 }
 0x405   : > { %v2313_v56 = vadd.f32 %v3997_v54, %v2312_v55  ;;  %v3944_v55 = vld [vmem:[%s5077_s27 + $0xa] ss:$0 sm:$0xff] }
 0x406   : > { %v4536_v57 = vpop.f32.mrf.mxu0  ;;  %4553 = vmatpush3.bf16.msra.mxu1 %v4788_v30 }
 0x407   : > { %v2433_v58 = vpack.c.bf16 %v2313_v56, %v2313_v56  ;;  %4570 = vmatprep.subr.bf16.mxu1 %v4910_v15  ;;  %v2648_v57 = vsel %vm2537_vm5, %v1655_v52, 0 }
 0x408   : > { %v2315_v59 = vpop.f32.mrf.mxu0 }
 0x409   : > { %v2438_v60 = vsel %vm1269_vm3, %v2433_v58, 0  ;;  %4555 = vmatmul.mubr.bf16.vlgmr.msra.gmra.mxu1 %v5181_v32  ;;  %v2038_v58 = vadd.f32 %v3944_v55, %v5400_v50 }
 0x40a   : > { %v4537_v62 = vpop.f32.mrf.mxu0  ;;  %4559 = vmatpush3.bf16.xpose.msra.mxu0 %v2438_v60  ;;  %4574 = vmatprep.mubr.msk.bf16.mxu1 %vm4911_vm2, %v4910_v15 }
 0x40b   : > { %4564 = vmatprep.subr.bf16.mxu0 %v4910_v15  ;;  %v2043_v61 = vpack.c.bf16 %v2038_v58, %v2038_v58 }
 0x40d   : > { %v2756_v60 = vsel %vm2537_vm5, %v2043_v61, 0 }
 0x42f   : > { %v2486_v31 = vpop.xlane.xlu0 %2485 }
 0x430   : > { %v2494_v33 = vsub.f32 %v5369_v27, %v2486_v31 }
 0x432   : > { %v2499_v34 = vmul.f32 1.442695, %v2494_v33  ;;  %v4795_v33 = vld [vmem:[%s5072_s22 + $0x38] sm:$0xff]  }
 0x433   : > { %v2507_v42 = vpop.xlane.xlu0 %2506 }
 0x489   : > { %v2086_v63 = vpop.f32.mrf.mxu1 }
 0x48a   : > { %v2487_v0 = vsel %vm2480_vm4, %v2086_v63, -inf }
 0x48b   : > { %2488 = vmax.xlane.f32.xlu1 %v2487_v0  ;;  %v4496_v1 = vpop.f32.mrf.mxu1  ;;  %v4789_v0 = vld [vmem:[%s5072_s22 + $0x8] sm:$0xff]  }
 0x48c   : > { %4571 = vmatpush3.bf16.msra.mxu1 %v4789_v0  ;;  %v4790_v1 = vld [vmem:[%s5072_s22] sm:$0xff]   ;;  %v4799_v0 = vld [vmem:[%s5096_s6 + $0x74] ss:$8 sps:$4 sm:$0xff]  }
 0x48d   : > { %v2089_v2 = vpop.f32.mrf.mxu1  ;;  %4572 = vmatprep.subr.bf16.mxu1 %v4910_v15 }
 0x48f   : > { %v4497_v3 = vpop.f32.mrf.mxu1 }
 0x490   : > { %4573 = vmatpush3.bf16.msra.mxu1 %v4790_v1  ;;  %v4802_v1 = vld [vmem:[%s5096_s6 + $0x64] ss:$8 sps:$4 sm:$0xff]  }
 0x491   : > { %4584 = vmatprep.subr.bf16.mxu1 %v4910_v15 }
 0x4a9   : > { %v2199_v8 = vpop.f32.mrf.mxu1 }
 0x4aa   : > { %v2200_v10 = vadd.f32 %v3971_v7, %v2199_v8 }
 0x4ab   : > { %v4516_v11 = vpop.f32.mrf.mxu1 }
 0x4ac   : > { %v2432_v12 = vpack.c.bf16 %v2200_v10, %v2200_v10 }
 0x4ad   : > { %v2202_v13 = vpop.f32.mrf.mxu1 }
 0x4ae   : > { %4561 = vmatmul.mubr.msk.bf16.vlgmr.msra.gmra.mxu0 %vm1269_vm3, %v2432_v12 }
 0x4af   : > { %4565 = vmatpush3.bf16.msra.mxu0 %v2539_v14  ;;  %v4517_v16 = vpop.f32.mrf.mxu1  ;;  %4566 = vmatprep.mubr.msk.bf16.mxu0 %vm4911_vm2, %v4910_v15 }
 0x4b0   : > { %4578 = vmatprep.subr.bf16.mxu0 %v4910_v15 }
 0x514   : > { %v2489_v6 = vpop.xlane.xlu1 %2488 }
 0x515   : > { %v2495_v17 = vsub.f32 %v2086_v63, %v2489_v6  ;;  %v4791_v6 = vld [vmem:[%s5072_s22 + $0x18] sm:$0xff]  }
 0x517   : > { %v2501_v18 = vmul.f32 1.442695, %v2495_v17 }
 0x519   : > { %4839 = vpow2.f32 %v2501_v18 }
 0x51a   : > { %4841 = vpow2.f32 %v2499_v34 }
 0x51b   : > { %4843 = vrcp.f32 %v2507_v42 }
 0x526   : > { %v5414_v19 = vpop.eup %4839 }
 0x527   : > { %v2511_v20 = vsel %vm2480_vm4, %v5414_v19, 0.0  ;;  %v4842_v37 = vpop.eup %4841 }
 0x528   : > { %2512 = vadd.xlane.f32.xlu0 %v2511_v20  ;;  %v2508_v40 = vsel %vm2480_vm4, %v4842_v37, 0.0  ;;  %v4844_v47 = vpop.eup %4843  ;;  %v4792_v20 = vld [vmem:[%s5072_s22 + $0x10] sm:$0xff]  }
 0x529   : > { %v2521_v53 = vmul.f32 %v4844_v47, %v5373_v29  ;;  %v2425_v29 = vpop.f32.mrf.mxu1 }
 0x52a   : > { %v2426_v5 = vadd.f32 %v4023_v4, %v2425_v29  ;;  %v4857_v29 = vld [vmem:[#allocation2] sm:$0xff] }
 0x52b   : > { %v4556_v62 = vpop.f32.mrf.mxu1 }
 0x52c   : > { %v2431_v8 = vpack.c.bf16 %v2426_v5, %v2426_v5 }
 0x52d   : > { %v2428_v50 = vpop.f32.mrf.mxu1 }
 0x52e   : > { %v2866_v12 = vsel %vm2537_vm5, %v2431_v8, 0  ;;  %v4805_v8 = vld [vmem:[%s5096_s6 + $0x54] ss:$8 sps:$4 sm:$0xff]  }
 0x52f   : > { %v4557_v63 = vpop.f32.mrf.mxu1 }
 0x530   : > { %v4797_v63 = vld [vmem:[%s5096_s6 + $0x70] ss:$8 sps:$4 sm:$0xff]  }
 0x56e   : > { %v2474_v35 = vpop.f32.mrf.mxu0 }
 0x56f   : > { %v2490_v36 = vsel %vm2480_vm4, %v2474_v35, -inf }
 0x570   : > { %2491 = vmax.xlane.f32.xlu1 %v2490_v36  ;;  %v4562_v38 = vpop.f32.mrf.mxu0 }
 0x572   : > { %v2477_v39 = vpop.f32.mrf.mxu0 }
 0x574   : > { %2509 = vadd.xlane.f32.xlu1 %v2508_v40  ;;  %v4563_v32 = vpop.f32.mrf.mxu0 }
 0x5b1   : > { %v2513_v2 = vpop.xlane.xlu0 %2512 }
 0x5f9   : > { %v2492_v41 = vpop.xlane.xlu1 %2491 }
 0x5fa   : > { %v2496_v43 = vsub.f32 %v2474_v35, %v2492_v41 }
 0x5fc   : > { %v2503_v44 = vmul.f32 1.442695, %v2496_v43 }
 0x5fd   : > { %v2510_v27 = vpop.xlane.xlu1 %2509 }
 0x5fe   : > { %4845 = vpow2.f32 %v2503_v44 }
 0x5ff   : > { %4847 = vrcp.f32 %v2510_v27 }
 0x600   : > { %4849 = vrcp.f32 %v2513_v2  ;;  %v4800_v2 = vld [vmem:[%s5096_s6 + $0x60] ss:$8 sps:$4 sm:$0xff]  }
 0x60b   : > { %v4846_v48 = vpop.eup %4845 }
 0x60c   : > { %v4848_v49 = vpop.eup %4847  ;;  %v2514_v51 = vsel %vm2480_vm4, %v4846_v48, 0.0 }
 0x60d   : > { %2515 = vadd.xlane.f32.xlu1 %v2514_v51  ;;  %v2522_v54 = vmul.f32 %v4848_v49, %v4842_v37  ;;  %v4850_v7 = vpop.eup %4849  ;;  %v4796_v37 = vld [vmem:[%s5072_s22 + $0x30] sm:$0xff]   ;;  %s5666_s22 = scalar_lea.vmem %s5614_s11, %s5054_s26 }
 0x60e   : > { %v2523_v10 = vmul.f32 %v4850_v7, %v5414_v19  ;;  %v4033_v27 = vld [vmem:[%s5666_s22] ss:$0 sm:$0xff] }
 0x60f   : > { %v2525_v56 = vpack.c.bf16 %v2522_v54, %v2521_v53 }
 0x611   : > { %4567 = vmatmul.mubr.msk.bf16.vlgmr.msra.gmra.mxu0 %vm2480_vm4, %v2525_v56  ;;  %v2643_v59 = vrot.slane %v2525_v56, 4 }
 0x612   : > { %4579 = vmatpush3.bf16.msra.mxu0 %v2648_v57  ;;  %4580 = vmatprep.mubr.msk.bf16.mxu0 %vm4911_vm2, %v4910_v15 }
 0x613   : > { %4592 = vmatprep.subr.bf16.mxu0 %v4910_v15 }
 0x619   : > { %4581 = vmatmul.mubr.msk.bf16.vlgmr.msra.gmra.mxu0 %vm2480_vm4, %v2643_v59 }
 0x61a   : > { %4593 = vmatpush3.bf16.msra.mxu0 %v2756_v60  ;;  %4594 = vmatprep.mubr.msk.bf16.mxu0 %vm4911_vm2, %v4910_v15 }
 0x61b   : > { %4606 = vmatprep.subr.bf16.mxu0 %v4910_v15 }
 0x696   : > { %v2516_v3 = vpop.xlane.xlu1 %2515 }
 0x697   : > { %4851 = vrcp.f32 %v2516_v3 }
 0x6a4   : > { %v4852_v9 = vpop.eup %4851 }
 0x6a5   : > { %v2524_v11 = vmul.f32 %v4852_v9, %v4846_v48  ;;  %v4803_v9 = vld [vmem:[%s5096_s6 + $0x50] ss:$8 sps:$4 sm:$0xff]  }
 0x6a7   : > { %v2526_v13 = vpack.c.bf16 %v2524_v11, %v2523_v10  ;;  %v4808_v10 = vld [vmem:[%s5096_s6 + $0x44] ss:$8 sps:$4 sm:$0xff]   ;;  %v4806_v11 = vld [vmem:[%s5096_s6 + $0x40] ss:$8 sps:$4 sm:$0xff]  }
 0x6a9   : > { %4595 = vmatmul.mubr.msk.bf16.vlgmr.msra.gmra.mxu0 %vm2480_vm4, %v2526_v13  ;;  %v2861_v14 = vrot.slane %v2526_v13, 4  ;;  %v4912_v13 = vmov 0  }
 0x6aa   : > { %4607 = vmatpush3.bf16.msra.mxu0 %v2866_v12  ;;  %4608 = vmatprep.mubr.msk.bf16.mxu0 %vm4911_vm2, %v4910_v15  ;;  %v4811_v12 = vld [vmem:[%s5096_s6 + $0x34] ss:$8 sps:$4 sm:$0xff]  }
 0x6ab   : > { %3108 = vmatprep.subr.bf16.mxu0 %v4799_v0  ;;  %v4080_v0 = vld [vmem:[%s824_s21] ss:$0 sm:$0xff]  ;;  %s5671_s21 = sld [smem:[#allocation14_spill]] (!%p4099_p8) }
 0x6b1   : > { %4609 = vmatmul.mubr.msk.bf16.vlgmr.msra.gmra.mxu0 %vm2480_vm4, %v2861_v14  ;;  %v4809_v14 = vld [vmem:[%s5096_s6 + $0x30] ss:$8 sps:$4 sm:$0xff]  }
 0x6b2   : > { %3109 = vmatpush1.bf16.msra.mxu0 %v4797_v63  ;;  %3140 = vmatprep.mubr.bf16.mxu0 %v4912_v13 }
 0x6b3   : > { %3110 = vmatprep.subr.bf16.mxu0 %v4802_v1 }
 0x6b6   : > { %3111 = vmatpush1.bf16.msra.mxu0 %v4800_v2 }
 0x6b7   : > { %3112 = vmatprep.subr.bf16.mxu0 %v4805_v8 }
 0x6ba   : > { %3113 = vmatpush1.bf16.msra.mxu0 %v4803_v9 }
 0x6bb   : > { %3114 = vmatprep.subr.bf16.mxu0 %v4808_v10 }
 0x6be   : > { %3115 = vmatpush1.bf16.msra.mxu0 %v4806_v11 }
 0x6bf   : > { %3116 = vmatprep.subr.bf16.mxu0 %v4811_v12 }
 0x6c2   : > { %3117 = vmatpush1.bf16.msra.mxu0 %v4809_v14 }
 0x6d1   : > { %v2575_v16 = vpop.f32.mrf.mxu0 }
 0x6d2   : > { %v2581_v17 = vpack.c.bf16 %v2575_v16, %v2575_v16  ;;  %v4814_v16 = vld [vmem:[%s5096_s6 + $0x24] ss:$8 sps:$4 sm:$0xff]  }
 0x6d3   : > { %v4568_v18 = vpop.f32.mrf.mxu0  ;;  %3118 = vmatprep.subr.bf16.mxu0 %v4814_v16 }
 0x6d4   : > { %4575 = vmatmul.mubr.msk.bf16.vlgmr.msra.gmra.mxu1 %vm1269_vm3, %v2581_v17  ;;  %v4817_v17 = vld [vmem:[%s5096_s6 + $0x14] ss:$8 sps:$4 sm:$0xff]   ;;  %v4815_v18 = vld [vmem:[%s5096_s6 + $0x10] ss:$8 sps:$4 sm:$0xff]  }
 0x6d5   : > { %v2578_v19 = vpop.f32.mrf.mxu0  ;;  %4585 = vmatpush3.bf16.msra.mxu1 %v4791_v6  ;;  %4588 = vmatprep.mubr.msk.bf16.mxu1 %vm4911_vm2, %v4910_v15  ;;  %v4812_v6 = vld [vmem:[%s5096_s6 + $0x20] ss:$8 sps:$4 sm:$0xff]  }
 0x6d6   : > { %4586 = vmatprep.subr.bf16.mxu1 %v4910_v15  ;;  %3119 = vmatpush1.bf16.msra.mxu0 %v4812_v6  ;;  %v4820_v19 = vld [vmem:[%s5096_s6 + $0x4] ss:$8 sps:$4 sm:$0xff]   ;;  %v4097_v6 = vld [vmem:[%s827_s10] ss:$0 sm:$0xff]  ;;  %s5673_s10 = sld [smem:[#allocation17_spill]] (!%p4099_p8) }
 0x6d7   : > { %v4569_v21 = vpop.f32.mrf.mxu0  ;;  %3120 = vmatprep.subr.bf16.mxu0 %v4817_v17 }
 0x6d8   : > { %v4821_v21 = vld [vmem:[%s5106_s20 + $0x78] sm:$0xff]  }
 0x6d9   : > { %v2684_v22 = vpop.f32.mrf.mxu0  ;;  %4587 = vmatpush3.bf16.msra.mxu1 %v4792_v20  ;;  %v4818_v20 = vld [vmem:[%s5096_s6] ss:$8 sps:$4 sm:$0xff]  }
 0x6da   : > { %v2690_v24 = vpack.c.bf16 %v2684_v22, %v2684_v22  ;;  %4598 = vmatprep.subr.bf16.mxu1 %v4910_v15  ;;  %3121 = vmatpush1.bf16.msra.mxu0 %v4815_v18  ;;  %v4822_v22 = vld [vmem:[%s5106_s20 + $0x38] sm:$0xff]   ;;  %v4098_v18 = vld [vmem:[%s830_s14] ss:$0 sm:$0xff] }
 0x6db   : > { %v4582_v25 = vpop.f32.mrf.mxu0  ;;  %3122 = vmatprep.subr.bf16.mxu0 %v4820_v19 }
 0x6dc   : > { %4589 = vmatmul.mubr.msk.bf16.vlgmr.msra.gmra.mxu1 %vm1269_vm3, %v2690_v24  ;;  %v4824_v24 = vld [vmem:[%s5106_s20 + $0x30] sm:$0xff]   ;;  %v4825_v25 = vld [vmem:[%s5106_s20 + $0x68] sm:$0xff]  }
 0x6dd   : > { %v2687_v26 = vpop.f32.mrf.mxu0  ;;  %4599 = vmatpush3.bf16.msra.mxu1 %v4793_v23  ;;  %4602 = vmatprep.mubr.msk.bf16.mxu1 %vm4911_vm2, %v4910_v15  ;;  %v4823_v23 = vld [vmem:[%s5106_s20 + $0x70] sm:$0xff]  }
 0x6de   : > { %4600 = vmatprep.subr.bf16.mxu1 %v4910_v15  ;;  %3123 = vmatpush1.bf16.msra.mxu0 %v4818_v20  ;;  %v4826_v26 = vld [vmem:[%s5106_s20 + $0x28] sm:$0xff]  }
 0x6df   : > { %v4583_v30 = vpop.f32.mrf.mxu0 }
 0x6e0   : > { %v4828_v30 = vld [vmem:[%s5106_s20 + $0x20] sm:$0xff]  }
 0x6e1   : > { %4601 = vmatpush3.bf16.msra.mxu1 %v4794_v28  ;;  %v4827_v28 = vld [vmem:[%s5106_s20 + $0x60] sm:$0xff]  }
 0x6e2   : > { %4612 = vmatprep.subr.bf16.mxu1 %v4910_v15 }
 0x769   : > { %v2792_v31 = vpop.f32.mrf.mxu0 }
 0x76a   : > { %v2798_v34 = vpack.c.bf16 %v2792_v31, %v2792_v31  ;;  %v4829_v31 = vld [vmem:[%s5106_s20 + $0x58] sm:$0xff]  }
 0x76b   : > { %v4596_v35 = vpop.f32.mrf.mxu0 }
 0x76c   : > { %4603 = vmatmul.mubr.msk.bf16.vlgmr.msra.gmra.mxu1 %vm1269_vm3, %v2798_v34  ;;  %v4831_v34 = vld [vmem:[%s5106_s20 + $0x50] sm:$0xff]  }
 0x76d   : > { %4613 = vmatpush3.bf16.msra.mxu1 %v4795_v33  ;;  %v2795_v36 = vpop.f32.mrf.mxu0  ;;  %4616 = vmatprep.mubr.msk.bf16.mxu1 %vm4911_vm2, %v4910_v15  ;;  %v4830_v33 = vld [vmem:[%s5106_s20 + $0x18] sm:$0xff]   ;;  %v4832_v35 = vld [vmem:[%s5106_s20 + $0x10] sm:$0xff]  }
 0x76e   : > { %4614 = vmatprep.subr.bf16.mxu1 %v4910_v15 }
 0x76f   : > { %v4597_v38 = vpop.f32.mrf.mxu0 }
 0x771   : > { %4615 = vmatpush3.bf16.msra.mxu1 %v4796_v37  ;;  %v2902_v39 = vpop.f32.mrf.mxu0 }
 0x772   : > { %v2908_v40 = vpack.c.bf16 %v2902_v39, %v2902_v39  ;;  %4257 = vmatprep.subr.bf16.mxu1 %v4821_v21 }
 0x773   : > { %v4610_v32 = vpop.f32.mrf.mxu0 }
 0x774   : > { %4617 = vmatmul.mubr.msk.bf16.vlgmr.msra.gmra.mxu1 %vm1269_vm3, %v2908_v40  ;;  %v4062_v40 = vld [vmem:[%s5667_s8] ss:$0 sm:$0xff] }
 0x775   : > { %v2905_v41 = vpop.f32.mrf.mxu0  ;;  %4258 = vmatpush3.bf16.msra.mxu1 %v4822_v22 }
 0x776   : > { %4259 = vmatprep.subr.bf16.mxu1 %v4823_v23  ;;  %v4063_v41 = vld [vmem:[%s5668_s28] ss:$0 sm:$0xff] }
 0x777   : > { %v4611_v42 = vpop.f32.mrf.mxu0 }
 0x779   : > { %4260 = vmatpush3.bf16.msra.mxu1 %v4824_v24 }
 0x77a   : > { %4261 = vmatprep.subr.bf16.mxu1 %v4825_v25 }
 0x77d   : > { %4262 = vmatpush3.bf16.msra.mxu1 %v4826_v26 }
 0x77e   : > { %4263 = vmatprep.subr.bf16.mxu1 %v4827_v28 }
 0x781   : > { %4264 = vmatpush3.bf16.msra.mxu1 %v4828_v30 }
 0x782   : > { %4265 = vmatprep.subr.bf16.mxu1 %v4829_v31 }
 0x785   : > { %4266 = vmatpush3.bf16.msra.mxu1 %v4830_v33 }
 0x786   : > { %4267 = vmatprep.subr.bf16.mxu1 %v4831_v34 }
 0x789   : > { %4268 = vmatpush3.bf16.msra.mxu1 %v4832_v35 }
 0x794   : > { %v2635_v43 = vpop.f32.mrf.mxu1 }
 0x795   : > { %v2641_v47 = vadd.f32 %v4033_v27, %v2635_v43  ;;  %v4833_v27 = vld [vmem:[%s5106_s20 + $0x48] sm:$0xff]  }
 0x796   : > { %v4576_v44 = vpop.f32.mrf.mxu1  ;;  %4269 = vmatprep.subr.bf16.mxu1 %v4833_v27 }
 0x798   : > { %v2638_v45 = vpop.f32.mrf.mxu1 }
 0x799   : > { %v4834_v45 = vld [vmem:[%s5106_s20 + $0x8] sm:$0xff]  }
 0x79a   : > { %v4577_v46 = vpop.f32.mrf.mxu1  ;;  %4270 = vmatpush3.bf16.msra.mxu1 %v4834_v45 }
 0x79b   : > { %v4835_v46 = vld [vmem:[%s5106_s20 + $0x40] sm:$0xff]  }
 0x79c   : > { %v2745_v15 = vpop.f32.mrf.mxu1  ;;  %4271 = vmatprep.subr.bf16.mxu1 %v4835_v46 }
 0x79d   : > { %v2751_v48 = vadd.f32 %v2745_v15, %v2641_v47  ;;  %v4836_v47 = vld [vmem:[%s5106_s20] sm:$0xff]   ;;  %v3018_v15 = vlaneseq }
 0x79e   : > { %v4590_v49 = vpop.f32.mrf.mxu1  ;;  %4272 = vmatpush3.bf16.msra.mxu1 %v4836_v47 }
 0x7a0   : > { %v2748_v51 = vpop.f32.mrf.mxu1 }
 0x7a1   : > { %v3016_v51 = vld [vmem:[%s5101_s29] sm:$0x3] }
 0x7a2   : > { %v4591_v52 = vpop.f32.mrf.mxu1 }
 0x82c   : > { %v2853_v53 = vpop.f32.mrf.mxu1 }
 0x82d   : > { %v2859_v57 = vadd.f32 %v2853_v53, %v2751_v48  ;;  %v3019_v48 = vshrl.u32 %v3018_v15, 7 }
 0x82e   : > { %v4604_v54 = vpop.f32.mrf.mxu1 }
 0x82f   : > { %v3020_v49 = vsub.s32 0, %v3019_v48  ;;  %v3024_v52 = vsub.s32 1, %v3019_v48 }
 0x830   : > { %v2856_v55 = vpop.f32.mrf.mxu1 }
 0x831   : > { %v3021_v53 = vrot.slane %v3016_v51, %v3020_v49  ;;  %v3025_v54 = vrot.slane %v3016_v51, %v3024_v52 }
 0x832   : > { %v4605_v56 = vpop.f32.mrf.mxu1 }
 0x834   : > { %v2963_v58 = vpop.f32.mrf.mxu1 }
 0x835   : > { %v2969_v61 = vadd.f32 %v2963_v58, %v2859_v57 }
 0x836   : > { %v4618_v59 = vpop.f32.mrf.mxu1 }
 0x837   : > { %v2970_v60 = vadd.f32 %v4857_v29, %v2969_v61 }
 0x838   : > { %v2966_v62 = vpop.f32.mrf.mxu1 }
 0x839   : > { %2973 = vadd.xlane.f32.xlu0 %v2970_v60 }
 0x83a   : > { %v4619_v50 = vpop.f32.mrf.mxu1 }
 0x8c2   : > { %v2974_v3 = vpop.xlane.xlu0 %2973 }
 0x8c3   : > { %v2976_v4 = vmul.f32 0.0078125, %v2974_v3 }
 0x8c5   : > { %v2977_v5 = vsub.f32 %v2970_v60, %v2976_v4 }
 0x8c7   : > { %v2978_v7 = vmul.f32 %v2977_v5, %v2977_v5 }
 0x8c9   : > { %2979 = vadd.xlane.f32.xlu1 %v2978_v7 }
 0x952   : > { %v2980_v36 = vpop.xlane.xlu1 %2979 }
 0x953   : > { %v2981_v37 = vmul.f32 0.0078125, %v2980_v36 }
 0x955   : > { %v2982_v38 = vadd.f32 1e-05, %v2981_v37 }
 0x957   : > { %4853 = vrsqrt.f32 %v2982_v38 }
 0x964   : > { %v4854_v39 = vpop.eup %4853 }
 0x965   : > { %v2984_v32 = vmul.f32 %v4854_v39, %v2977_v5 }
 0x967   : > { %v2991_v42 = vmul.f32 %v4062_v40, %v2984_v32 }
 0x969   : > { %v2998_v43 = vadd.f32 %v4063_v41, %v2991_v42 }
 0x96b   : > { %v2999_v44 = vpack.c.bf16 %v2998_v43, %v2998_v43 }
 0x96d   : > { %3141 = vmatmul.mubr.bf16.vlgmr.msra.gmra.mxu0 %v2999_v44 }
 0xa2d   : > { %v3142_v55 = vpop.f32.mrf.mxu0 }
 0xa2e   : > { %v3143_v56 = vadd.f32 %v3142_v55, %v3021_v53 }
 0xa2f   : > { %v3144_v57 = vpop.f32.mrf.mxu0 }
 0xa30   : > { %v3145_v58 = vadd.f32 %v3144_v57, %v3025_v54  ;;  %v3149_v61 = vmax.f32 %v3143_v56, 0.0 }
 0xa31   : > { %v3146_v59 = vpop.f32.mrf.mxu0 }
 0xa32   : > { %v3150_v29 = vmax.f32 %v3145_v58, 0.0  ;;  %v3151_v50 = vpack.c.bf16 %v3149_v61, %v3149_v61 }
 0xa33   : > { %v3147_v60 = vpop.f32.mrf.mxu0 }
 0xa34   : > { %v3152_v62 = vpack.c.bf16 %v3150_v29, %v3150_v29 }
 0xa36   : > { %3320 = vmatprep.mubr.bf16.mxu1 %v3152_v62 }
 0xa37   : > { %3321 = vmatmul.mubr.bf16.vlgmr.msra.gmra.mxu1 %v3151_v50 }
 0xaf7   : > { %v4273_v63 = vpop.f32.mrf.mxu1 }
 0xaf9   : > { %v4274_v1 = vpop.f32.mrf.mxu1 }
 0xafa   : > { %v4275_v2 = vadd.f32 %v4274_v1, %v4273_v63 }
 0xafb   : > { %v4276_v3 = vpop.f32.mrf.mxu1 }
 0xafc   : > { %v3323_v4 = vadd.f32 %v4275_v2, %v4080_v0 }
 0xafd   : > { %v4277_v5 = vpop.f32.mrf.mxu1 }
 0xafe   : > { %v3328_v7 = vadd.f32 %v3323_v4, %v2998_v43 }
 0xb00   : > { %3331 = vadd.xlane.f32.xlu0 %v3328_v7 }
 0xb89   : > { %v3332_v8 = vpop.xlane.xlu0 %3331 }
 0xb8a   : > { %v3333_v9 = vmul.f32 0.0078125, %v3332_v8 }
 0xb8c   : > { %v3334_v10 = vsub.f32 %v3328_v7, %v3333_v9 }
 0xb8e   : > { %v3335_v11 = vmul.f32 %v3334_v10, %v3334_v10 }
 0xb90   : > { %3336 = vadd.xlane.f32.xlu1 %v3335_v11 }
 0xc19   : > { %v3337_v12 = vpop.xlane.xlu1 %3336 }
 0xc1a   : > { %v3338_v13 = vmul.f32 0.0078125, %v3337_v12 }
 0xc1c   : > { %v3339_v14 = vadd.f32 1e-05, %v3338_v13 }
 0xc1e   : > { %4855 = vrsqrt.f32 %v3339_v14 }
 0xc2b   : > { %v4856_v16 = vpop.eup %4855 }
 0xc2c   : > { %v3341_v17 = vmul.f32 %v4856_v16, %v3334_v10 }
 0xc2e   : > { %v3348_v19 = vmul.f32 %v4097_v6, %v3341_v17  ;;  %3360 = sbr.rel (%p4099_p8) target bundleno = 4060 (0xfdc), region = 108 }
 0xc30   : > { %v3355_v20 = vadd.f32 %v4098_v18, %v3348_v19 }
 0xc32   : > { %3356 = vst [vmem:[#allocation2] sm:$0xff] %v3355_v20 }
 0xc33   : > { %v4858_v22 = vld [vmem:[%s5670_s30 + $0x38] sm:$0xff]   ;;  %v4913_v23 = vmov 0.0   ;;  %v4859_v24 = vld [vmem:[%s5670_s30 + $0x30] sm:$0xff]   ;;  %v4860_v31 = vld [vmem:[%s5670_s30 + $0x28] sm:$0xff]   ;;  %vm4914_vm6 = vmmov 0   ;;  %v3502_v53 = vand.u32 127, %v3018_v15 }
 0xc34   : > { %4620 = vmatprep.subr.bf16.mxu0 %v4913_v23  ;;  %v4861_v33 = vld [vmem:[%s5670_s30 + $0x20] sm:$0xff]   ;;  %4636 = vmatprep.mubr.msk.bf16.mxu0 %vm4914_vm6, %v4913_v23  ;;  %v4862_v34 = vld [vmem:[%s5670_s30 + $0x18] sm:$0xff]   ;;  %v4863_v35 = vld [vmem:[%s5670_s30 + $0x10] sm:$0xff]  }
 0xc35   : > { %4621 = vmatpush3.bf16.msra.mxu0 %v4858_v22  ;;  %v4864_v36 = vld [vmem:[%s5670_s30 + $0x8] sm:$0xff]   ;;  %v4865_v37 = vld [vmem:[%s5670_s30] sm:$0xff]  }
 0xc36   : > { %4622 = vmatprep.subr.bf16.mxu0 %v4913_v23  ;;  %v4100_v41 = vld [vmem:[%s5671_s21] ss:$0 sm:$0xff] }
 0xc37   : > { %v4101_v43 = vld [vmem:[%s5672_s4] ss:$0 sm:$0xff] }
 0xc38   : > { %v4102_v46 = vld [vmem:[%s5673_s10] ss:$0 sm:$0xff] }
 0xc39   : > { %v3361_v21 = vld [vmem:[#allocation2] sm:$0xff]  ;;  %4623 = vmatpush3.bf16.msra.mxu0 %v4859_v24 }
 0xc3a   : > { %3364 = vadd.xlane.f32.xlu0 %v3361_v21  ;;  %4624 = vmatprep.subr.bf16.mxu0 %v4913_v23 }
 0xc3d   : > { %4625 = vmatpush3.bf16.msra.mxu0 %v4860_v31 }
 0xc3e   : > { %4626 = vmatprep.subr.bf16.mxu0 %v4913_v23 }
 0xc41   : > { %4627 = vmatpush3.bf16.msra.mxu0 %v4861_v33 }
 0xc42   : > { %4628 = vmatprep.subr.bf16.mxu0 %v4913_v23 }
 0xc45   : > { %4629 = vmatpush3.bf16.msra.mxu0 %v4862_v34 }
 0xc46   : > { %4630 = vmatprep.subr.bf16.mxu0 %v4913_v23 }
 0xc49   : > { %4631 = vmatpush3.bf16.msra.mxu0 %v4863_v35 }
 0xc4a   : > { %4632 = vmatprep.subr.bf16.mxu0 %v4913_v23 }
 0xc4d   : > { %4633 = vmatpush3.bf16.msra.mxu0 %v4864_v36 }
 0xc4e   : > { %4634 = vmatprep.subr.bf16.mxu0 %v4913_v23 }
 0xc51   : > { %4635 = vmatpush3.bf16.msra.mxu0 %v4865_v37 }
 0xcc3   : > { %v3365_v25 = vpop.xlane.xlu0 %3364 }
 0xcc4   : > { %v3366_v26 = vmul.f32 0.0078125, %v3365_v25 }
 0xcc6   : > { %v3367_v28 = vsub.f32 %v3361_v21, %v3366_v26 }
 0xcc8   : > { %v3368_v30 = vmul.f32 %v3367_v28, %v3367_v28 }
 0xcca   : > { %3369 = vadd.xlane.f32.xlu0 %v3368_v30 }
 0xd53   : > { %v3370_v38 = vpop.xlane.xlu0 %3369 }
 0xd54   : > { %v3371_v39 = vmul.f32 0.0078125, %v3370_v38 }
 0xd56   : > { %v3372_v40 = vadd.f32 1e-05, %v3371_v39 }
 0xd58   : > { %4866 = vrsqrt.f32 %v3372_v40 }
 0xd65   : > { %v4867_v32 = vpop.eup %4866 }
 0xd66   : > { %v3374_v42 = vmul.f32 %v4867_v32, %v3367_v28 }
 0xd68   : > { %v3381_v44 = vmul.f32 %v4100_v41, %v3374_v42 }
 0xd6a   : > { %v3388_v27 = vadd.f32 %v4101_v43, %v3381_v44 }
 0xd6c   : > { %v3389_v45 = vpack.c.bf16 %v3388_v27, %v3388_v27 }
 0xd6e   : > { %4637 = vmatmul.mubr.bf16.vlgmr.msra.gmra.mxu0 %v3389_v45 }
 0xe2e   : > { %v3495_v47 = vpop.f32.mrf.mxu0 }
 0xe2f   : > { %v3496_v48 = vadd.f32 %v4102_v46, %v3495_v47 }
 0xe30   : > { %v4638_v49 = vpop.f32.mrf.mxu0 }
 0xe31   : > { %3503 = vmax.xlane.f32.xlu1 %v3496_v48 }
 0xe32   : > { %v3498_v51 = vpop.f32.mrf.mxu0 }
 0xe34   : > { %v4639_v52 = vpop.f32.mrf.mxu0 }
 0xeba   : > { %v3504_v54 = vpop.xlane.xlu1 %3503 }
 0xebb   : > { %vm3505_vm7 = vcmp.ge.f32.partialorder %v3496_v48, %v3504_v54 }
 0xebc   : > { %v3506_v55 = vsel %vm3505_vm7, %v3502_v53, 128 }
 0xebd   : > { %v3508_v56 = vshra.s32 %v3506_v55, 16  ;;  %v3507_v58 = vand.u32 65535, %v3506_v55 }
 0xebf   : > { %v3510_v57 = vcvt.s32.f32 %v3508_v56  ;;  %v3509_v59 = vcvt.s32.f32 %v3507_v58 }
 0xec1   : > { %3511 = vmin.xlane.f32.xlu1 %v3510_v57 }
 0xf4a   : > { %v3512_v61 = vpop.xlane.xlu1 %3511 }
 0xf4b   : > { %vm3513_vm8 = vcmp.eq.f32.partialorder %v3510_v57, %v3512_v61  ;;  %v3518_v60 = vcvt.f32.s32 %v3512_v61 }
 0xf4c   : > { %v3514_v29 = vsel %vm3513_vm8, %v3509_v59, inf }
 0xf4d   : > { %3515 = vmin.xlane.f32.xlu0 %v3514_v29  ;;  %v3519_v50 = vshll.u32 %v3518_v60, 16 }
 0xfd6   : > { %v3516_v62 = vpop.xlane.xlu0 %3515 }
 0xfd7   : > { %v3517_v63 = vcvt.f32.s32 %v3516_v62 }
 0xfd9   : > { %v3520_v0 = vadd.s32 %v3519_v50, %v3517_v63 }
 0xfdb   : > { %3521 = vst [vmem:[%s5123_s15] sm:$0xff] %v3520_v0 }
 0xfdc PF: > { %s5674_s1 = sld [smem:[#allocation6_spill]] }
 0xfdd   : > { %s5676_s22 = sld [smem:[#allocation5_spill]] }
 0xfde   : > { %s5677_s23 = sld [smem:[#allocation7_spill]] }
 0xfdf   : > { %s5678_s24 = sld [smem:[#allocation8_spill]] }
 0xfe2   : > { %s30_s2 = sadd.s32 1, %s5674_s1   ;;  %s5675_s1 = sld [smem:[#allocation4_spill]] }
 0xfe3   : > { %p27_p9 = scmp.ge.s32.totalorder %s30_s2, 6  }
 0xfe5   :  { %29 = sbr.rel (!%p27_p9) target bundleno = 16 (0x10), region = 199 }

</bundles_post_ra>
